<compile_context>
chip_gen: v7x
topology: tpu7x:2x2x1
jax: 0.10.0
libtpu: 0.0.40
codegen_flags: <defaults>
</compile_context>

<pallas_src>
from functools import partial

import numpy as np
import jax
import jax.numpy as jnp
from jax import lax
from jax.experimental import pallas as pl
from jax.experimental.pallas import tpu as pltpu

_LN_EPS = 1e-5


# ----------------------------------------------------------------------------- helpers
def _round_up(v, m):
    return (v + m - 1) // m * m


def _pad2(a, rows, cols, dtype=jnp.float32):
    a = jnp.asarray(a, jnp.float32)
    out = jnp.zeros((rows, cols), jnp.float32)
    out = out.at[: a.shape[0], : a.shape[1]].set(a)
    return out.astype(dtype)


def _pick_tile(dim_pad, cap):
    """Largest multiple of 128 <= cap that divides dim_pad (dim_pad is a multiple of 128)."""
    cap = max(128, (cap // 128) * 128)
    t = min(cap, dim_pad)
    while dim_pad % t != 0:
        t -= 128
    return t


# ----------------------------------------------------------------------------- kernel 1
# Per row-tile: LayerNorm(x) @ W_conv (once, at edge-tile 0) + index-driven segment-sum of
# the projected edge features into agg.  grid = (row tiles, edge tiles).  Scalar-prefetched
# per-edge-tile dst ranges let dead (row-tile, edge-tile) pairs skip both matmuls.
def _prep_kernel(tmin_ref, tmax_ref,
                 x_ref, gamma_ref, beta_ref, wconv_ref, wedge_ref, bedge_ref,
                 dst_ref, eattr_ref,
                 hw_ref, agg_ref,
                 acc_ref,
                 *, f_real, tm, te):
    i = pl.program_id(0)
    t = pl.program_id(1)
    row_lo = i * tm

    @pl.when(t == 0)
    def _():
        x = x_ref[...]
        lane = lax.broadcasted_iota(jnp.int32, x.shape, 1)
        mask = lane < f_real                      # feature axis is zero-padded to 128 lanes
        mean = jnp.sum(x, axis=-1, keepdims=True) * (1.0 / f_real)
        diff = jnp.where(mask, x - mean, 0.0)
        var = jnp.sum(diff * diff, axis=-1, keepdims=True) * (1.0 / f_real)
        h = diff * lax.rsqrt(var + _LN_EPS) * gamma_ref[...] + beta_ref[...]
        hw = jnp.dot(h.astype(jnp.bfloat16), wconv_ref[...],   # bf16 MXU, f32 accumulate
                     preferred_element_type=jnp.float32)
        hw_ref[...] = hw.astype(hw_ref.dtype)
        acc_ref[...] = jnp.zeros_like(acc_ref)

    # Edges are dst-sorted; this tile's dst range is [tmin, tmax]. Skip everything if it
    # cannot touch rows [row_lo, row_lo + tm). Correctness never depends on the skip being
    # tight (the one-hot match below is exact), only on never skipping a live tile.
    live = jnp.logical_and(tmax_ref[t] >= row_lo, tmin_ref[t] < row_lo + tm)

    @pl.when(live)
    def _():
        # edge_proj = ReLU(Linear(16 -> F)) on this edge tile (Dropout == identity in eval).
        ef = jnp.dot(eattr_ref[...], wedge_ref[...],
                     preferred_element_type=jnp.float32) + bedge_ref[...]
        ef = jnp.maximum(ef, 0.0).astype(jnp.bfloat16)
        # scatter_add(ef, dst): 0/1 gather matrix built on chip from the streamed dst
        # indices, directly in bf16 (0/1 exact); the dense [N, E] matrix never exists.
        dst = dst_ref[...]                                            # (1, te) int32, -1 = pad
        rows = row_lo + lax.broadcasted_iota(jnp.int32, (tm, te), 0)  # global node rows
        onehot = (rows == dst).astype(jnp.bfloat16)
        acc_ref[...] += jnp.dot(onehot, ef, preferred_element_type=jnp.float32)

    @pl.when(t == pl.num_programs(1) - 1)
    def _():
        agg_ref[...] = acc_ref[...].astype(agg_ref.dtype)             # bf16 HBM write


# ----------------------------------------------------------------------------- kernel 2
# Tiled conv_out = A_norm @ hw (+b), then the gate/combine/ReLU epilogue on the last k step.
def _conv_combine_kernel(adj_ref, hw_ref, agg_ref, bconv_ref, wco_ref, wca_ref,
                         bcomb_ref, o_ref, acc_ref, *, tk, hw_resident):
    k = pl.program_id(1)

    @pl.when(k == 0)
    def _():
        acc_ref[...] = jnp.zeros_like(acc_ref)

    if hw_resident:
        # hw is a single VMEM-resident (N_pad, F_pad) block; slice the k-th row band.
        off = pl.multiple_of(k * tk, tk)
        hw_blk = hw_ref[pl.ds(off, tk), :]
    else:
        hw_blk = hw_ref[...]
    acc_ref[...] += jnp.dot(adj_ref[...], hw_blk, preferred_element_type=jnp.float32)

    @pl.when(k == pl.num_programs(1) - 1)
    def _():
        conv_out = acc_ref[...] + bconv_ref[...]
        agg = agg_ref[...]                                            # bf16
        # edge_combine: sigmoid(Linear(cat([conv_out, agg], -1))) as two bf16 half-matmuls.
        gate = jax.nn.sigmoid(
            jnp.dot(conv_out.astype(jnp.bfloat16), wco_ref[...],
                    preferred_element_type=jnp.float32)
            + jnp.dot(agg, wca_ref[...], preferred_element_type=jnp.float32)
            + bcomb_ref[...])
        agg_f = agg.astype(jnp.float32)
        out = gate * conv_out + (1.0 - gate) * agg_f
        o_ref[...] = jnp.maximum(out, 0.0).astype(o_ref.dtype)        # Dropout(0.1)==id, ReLU


# ----------------------------------------------------------------------------- adjacency
def build_normalized_adjacency(edge_index, edge_weight, n_pad):
    """bf16 dense D^-1/2 (A_w) D^-1/2 (PyG gcn_norm with edge_weight; duplicates merge by sum).

    Graph-invariant: build it ONCE per graph and pass it to cognn_layer_apply(adj=...) so the
    N_pad^2 construction stays off the steady-state per-layer path.
    """
    src = jnp.asarray(edge_index[0], jnp.int32)
    dst = jnp.asarray(edge_index[1], jnp.int32)
    ew = jnp.asarray(edge_weight, jnp.float32)
    deg = jnp.zeros((n_pad,), jnp.float32).at[dst].add(ew)
    dinv = jnp.where(deg > 0, 1.0 / jnp.sqrt(deg), 0.0)
    norm = dinv[src] * ew * dinv[dst]
    return jnp.zeros((n_pad, n_pad), jnp.float32).at[dst, src].add(norm).astype(jnp.bfloat16)


# ----------------------------------------------------------------------------- wrapper
def cognn_layer_apply(x, edge_index, edge_attr, edge_weight, params, *,
                      adj=None, tm=512, tk=2048, te=512,
                      adj_buffer_count=2, vmem_limit_bytes=48 * 1024 * 1024):
    """CoGNNLayer forward (eval mode, action_args=None).

    x           : [N, F] float32 node features (in_channels == out_channels == F)
    edge_index  : [2, E] int  (already self-loop-augmented via prepare_edge_attr)
    edge_attr   : [E, 16] float32
    edge_weight : [E] float32
    adj         : optional cached bf16 [N_pad, N_pad] from build_normalized_adjacency
    adj_buffer_count : set to 3 on v5e to deepen the adjacency DMA pipeline
    vmem_limit_bytes : 48 MB default is v7x-safe (64 MiB VMEM); v6e/v5e can raise it
    """
    x = jnp.asarray(x, jnp.float32)
    N, F = x.shape
    dst = jnp.asarray(edge_index[1], jnp.int32)
    ea = jnp.asarray(edge_attr, jnp.float32)
    E = int(ea.shape[0])
    edim = int(ea.shape[1])

    F_pad = _round_up(F, 128)            # lane-dense feature axis
    N_pad = _round_up(N, 128)
    tm = _pick_tile(N_pad, tm)
    if N_pad // tm < 2 and N_pad >= 256:
        tm = _pick_tile(N_pad, N_pad // 2)   # >=2 row tiles so v7x's 2 TCs both get work
    tk = _pick_tile(N_pad, tk)
    te = max(128, (te // 128) * 128)
    E_pad = _round_up(max(E, 1), te)
    n_et = E_pad // te

    if adj is None:
        adj = build_normalized_adjacency(edge_index, edge_weight, N_pad)
    adj = jnp.asarray(adj, jnp.bfloat16)

    # Sort edges by dst so each node's edges land in few edge tiles -> live-tile skipping.
    # (scatter_add and gcn_norm are order-insensitive, so this is semantics-preserving.)
    order = jnp.argsort(dst)
    dst_s = dst[order]
    ea_s = ea[order]

    dst_p = jnp.full((1, E_pad), -1, jnp.int32).at[0, :E].set(dst_s)   # -1 never matches a row
    ea_p = _pad2(ea_s, E_pad, edim)

    dst_tiles = dst_p.reshape(n_et, te)
    tile_max = jnp.max(dst_tiles, axis=1).astype(jnp.int32)
    tile_min = jnp.min(jnp.where(dst_tiles >= 0, dst_tiles, jnp.iinfo(jnp.int32).max),
                       axis=1).astype(jnp.int32)

    # Padded operands (zero pad; pad lanes/rows provably stay zero or are sliced off).
    x_p = _pad2(x, N_pad, F_pad)
    gamma = _pad2(params["ln_gamma"].reshape(1, F), 1, F_pad)
    beta = _pad2(params["ln_beta"].reshape(1, F), 1, F_pad)
    w_conv = _pad2(params["w_conv"], F_pad, F_pad, jnp.bfloat16)
    b_conv = _pad2(params["b_conv"].reshape(1, F), 1, F_pad)
    w_edge = _pad2(params["w_edge"], edim, F_pad)
    b_edge = _pad2(params["b_edge"].reshape(1, F), 1, F_pad)
    # combine Linear consumed cat([conv_out, agg], -1): first F input rows pair with conv_out.
    w_comb_out = _pad2(params["w_comb"][:F, :], F_pad, F_pad, jnp.bfloat16)
    w_comb_agg = _pad2(params["w_comb"][F:, :], F_pad, F_pad, jnp.bfloat16)
    b_comb = _pad2(params["b_comb"].reshape(1, F), 1, F_pad)

    cparams = pltpu.CompilerParams(
        dimension_semantics=("parallel", "arbitrary"),   # row tiles megacore-shardable
        vmem_limit_bytes=vmem_limit_bytes)

    # ---- kernel 1: LayerNorm + h @ W_conv (once per row tile) + skipping edge aggregation
    hw, agg = pl.pallas_call(
        partial(_prep_kernel, f_real=F, tm=tm, te=te),
        grid_spec=pltpu.PrefetchScalarGridSpec(
            num_scalar_prefetch=2,                       # tile_min, tile_max -> SMEM
            grid=(N_pad // tm, n_et),
            in_specs=[
                pl.BlockSpec((tm, F_pad), lambda i, t, *_: (i, 0)),      # x
                pl.BlockSpec((1, F_pad), lambda i, t, *_: (0, 0)),       # ln gamma
                pl.BlockSpec((1, F_pad), lambda i, t, *_: (0, 0)),       # ln beta
                pl.BlockSpec((F_pad, F_pad), lambda i, t, *_: (0, 0)),   # w_conv (bf16)
                pl.BlockSpec((edim, F_pad), lambda i, t, *_: (0, 0)),    # w_edge
                pl.BlockSpec((1, F_pad), lambda i, t, *_: (0, 0)),       # b_edge
                pl.BlockSpec((1, te), lambda i, t, *_: (0, t)),          # dst indices (int32)
                pl.BlockSpec((te, edim), lambda i, t, *_: (t, 0)),       # edge_attr
            ],
            out_specs=(
                pl.BlockSpec((tm, F_pad), lambda i, t, *_: (i, 0)),      # hw (bf16)
                pl.BlockSpec((tm, F_pad), lambda i, t, *_: (i, 0)),      # agg (bf16)
            ),
            scratch_shapes=[pltpu.VMEM((tm, F_pad), jnp.float32)]),      # f32 agg accumulator
        out_shape=(
            jax.ShapeDtypeStruct((N_pad, F_pad), jnp.bfloat16),
            jax.ShapeDtypeStruct((N_pad, F_pad), jnp.bfloat16),
        ),
        compiler_params=cparams,
    )(tile_min, tile_max, x_p, gamma, beta, w_conv, w_edge, b_edge, dst_p, ea_p)

    # ---- kernel 2: tiled A_norm @ hw with f32 accumulator, gate/combine/ReLU epilogue
    hw_resident = (N_pad * F_pad * 2) <= 8 * 1024 * 1024      # keep hw fully in VMEM if it fits
    if hw_resident:
        hw_spec = pl.BlockSpec((N_pad, F_pad), lambda i, k: (0, 0))
    else:
        hw_spec = pl.BlockSpec((tk, F_pad), lambda i, k: (k, 0))

    if adj_buffer_count > 2:                                  # v5e: deepen the adj DMA pipeline
        adj_spec = pl.BlockSpec((tm, tk), lambda i, k: (i, k),
                                pipeline_mode=pl.Buffered(adj_buffer_count))
    else:
        adj_spec = pl.BlockSpec((tm, tk), lambda i, k: (i, k))

    cost = pl.CostEstimate(
        flops=2 * N_pad * N_pad * F_pad + 4 * N_pad * F_pad * F_pad,
        transcendentals=N_pad * F_pad,
        bytes_accessed=2 * N_pad * N_pad + 3 * 2 * N_pad * F_pad + 4 * N_pad * F_pad)

    out_p = pl.pallas_call(
        partial(_conv_combine_kernel, tk=tk, hw_resident=hw_resident),
        grid=(N_pad // tm, N_pad // tk),
        in_specs=[
            adj_spec,                                            # adj (bf16), streamed
            hw_spec,                                             # hw  (bf16), resident if small
            pl.BlockSpec((tm, F_pad), lambda i, k: (i, 0)),      # agg (bf16)
            pl.BlockSpec((1, F_pad), lambda i, k: (0, 0)),       # b_conv
            pl.BlockSpec((F_pad, F_pad), lambda i, k: (0, 0)),   # w_comb conv half (bf16)
            pl.BlockSpec((F_pad, F_pad), lambda i, k: (0, 0)),   # w_comb agg  half (bf16)
            pl.BlockSpec((1, F_pad), lambda i, k: (0, 0)),       # b_comb
        ],
        out_specs=pl.BlockSpec((tm, F_pad), lambda i, k: (i, 0)),
        out_shape=jax.ShapeDtypeStruct((N_pad, F_pad), jnp.float32),
        scratch_shapes=[pltpu.VMEM((tm, F_pad), jnp.float32)],
        compiler_params=cparams,
        cost_estimate=cost,
    )(adj, hw, agg, b_conv, w_comb_out, w_comb_agg, b_comb)

    return out_p[:N, :F]


# ----------------------------------------------------------------------------- host glue
def prepare_edge_attr(edge_index, edge_attr, num_nodes):
    """Host-side mirror of CoGNNLayer.prepare_edge_attr (static shapes)."""
    ei = np.asarray(edge_index)
    ea = np.asarray(edge_attr, dtype=np.float32)
    mask = ei[0] != ei[1]                               # remove_self_loops
    ei, ea = ei[:, mask], ea[mask]
    ew = np.sqrt((ea * ea).sum(-1)).astype(np.float32)
    loops = np.arange(num_nodes, dtype=ei.dtype)
    ei = np.concatenate([ei, np.stack([loops, loops])], axis=1)          # add_self_loops
    ea = np.concatenate([ea, np.ones((num_nodes, ea.shape[1]), np.float32)], axis=0)
    ew = np.concatenate([ew, np.ones(num_nodes, np.float32)])
    return ei, ea, ew


def init_params(key, in_channels, out_channels, edge_dim=16):
    ks = jax.random.split(key, 6)

    def unif(k, shape, fan_in):
        b = 1.0 / np.sqrt(fan_in)
        return jax.random.uniform(k, shape, jnp.float32, -b, b)

    return dict(
        ln_gamma=jnp.ones((out_channels,), jnp.float32),
        ln_beta=jnp.zeros((out_channels,), jnp.float32),
        w_conv=unif(ks[0], (in_channels, out_channels), in_channels),
        b_conv=unif(ks[1], (out_channels,), in_channels),
        w_edge=unif(ks[2], (edge_dim, out_channels), edge_dim),
        b_edge=unif(ks[3], (out_channels,), edge_dim),
        w_comb=unif(ks[4], (2 * out_channels, out_channels), 2 * out_channels),
        b_comb=unif(ks[5], (out_channels,), 2 * out_channels),
    )


def cognn_reference(x, edge_index, edge_attr, edge_weight, params):
    """Pure-JAX f32 scatter-based emulation of the torch forward (eval mode)."""
    x = jnp.asarray(x, jnp.float32)
    N, F = x.shape
    src = jnp.asarray(edge_index[0], jnp.int32)
    dst = jnp.asarray(edge_index[1], jnp.int32)
    ew = jnp.asarray(edge_weight, jnp.float32)
    ea = jnp.asarray(edge_attr, jnp.float32)

    mean = jnp.mean(x, -1, keepdims=True)
    var = jnp.mean((x - mean) ** 2, -1, keepdims=True)
    h = (x - mean) * lax.rsqrt(var + _LN_EPS) * params["ln_gamma"] + params["ln_beta"]

    deg = jnp.zeros((N,), jnp.float32).at[dst].add(ew)
    dinv = jnp.where(deg > 0, 1.0 / jnp.sqrt(deg), 0.0)
    norm = dinv[src] * ew * dinv[dst]
    hw = h @ params["w_conv"]
    conv_out = jnp.zeros((N, F), jnp.float32).at[dst].add(hw[src] * norm[:, None]) + params["b_conv"]

    ef = jnp.maximum(ea @ params["w_edge"] + params["b_edge"], 0.0)
    agg = jnp.zeros((N, F), jnp.float32).at[dst].add(ef)

    gate = jax.nn.sigmoid(jnp.concatenate([conv_out, agg], -1) @ params["w_comb"] + params["b_comb"])
    out = gate * conv_out + (1 - gate) * agg
    return jnp.maximum(out, 0.0)


# TODO(synk): ActionNet / gumbel_softmax branch not implemented (corresponds to action_args=None);
#             ActionNet's definition was not part of the provided module.
if __name__ == "__main__":
    key = jax.random.PRNGKey(0)
    k_x, k_e, k_a, k_p = jax.random.split(key, 4)

    # small but multi-tile: N=300 nodes (-> 384 padded, 3 row tiles at tm=128 after the
    # >=2-row-tile heuristic), F=64 channels (padded to 128 lanes), ~1200 edges (-> 3 edge
    # tiles of 512 with dst-sorted skipping exercised).
    N, F, EDIM, E0 = 300, 64, 16, 900
    x = jax.random.normal(k_x, (N, F), jnp.float32)
    edge_index0 = np.asarray(jax.random.randint(k_e, (2, E0), 0, N), np.int32)
    edge_attr0 = np.asarray(jax.random.normal(k_a, (E0, EDIM), jnp.float32))
    params = init_params(k_p, F, F, EDIM)

    edge_index, edge_attr, edge_weight = prepare_edge_attr(edge_index0, edge_attr0, N)

    # Adjacency is graph-invariant: build it once (cacheable) and pass it in.
    N_pad = _round_up(N, 128)
    adj = jax.block_until_ready(build_normalized_adjacency(edge_index, edge_weight, N_pad))

    out = cognn_layer_apply(x, edge_index, edge_attr, edge_weight, params, adj=adj)
    out = jax.block_until_ready(out)

    ref = jax.block_until_ready(cognn_reference(x, edge_index, edge_attr, edge_weight, params))
    assert out.shape == (N, F)
    assert bool(jnp.all(out >= 0.0))
    err = float(jnp.max(jnp.abs(out - ref)))
    tol = 5e-2 * (1.0 + float(jnp.max(jnp.abs(ref))))   # bf16 adj/hw/agg + bf16 epilogue headroom
    assert err < tol, f"max |kernel - reference| = {err} (tol {tol})"
    print("KERNEL_OK")
</pallas_src>

<mosaic_0001>
module attributes {stable_mosaic.version = 11 : i64} {
  func.func @_prep_kernel(%arg0: i32, %arg1: i32, %arg2: memref<3xi32, #tpu.memory_space<smem>>, %arg3: memref<3xi32, #tpu.memory_space<smem>>, %arg4: memref<128x128xf32, #tpu.memory_space<vmem>>, %arg5: memref<1x128xf32, #tpu.memory_space<vmem>>, %arg6: memref<1x128xf32, #tpu.memory_space<vmem>>, %arg7: memref<128x128xbf16, #tpu.memory_space<vmem>>, %arg8: memref<16x128xf32, #tpu.memory_space<vmem>>, %arg9: memref<1x128xf32, #tpu.memory_space<vmem>>, %arg10: memref<1x512xi32, #tpu.memory_space<vmem>>, %arg11: memref<512x16xf32, #tpu.memory_space<vmem>>, %arg12: memref<128x128xbf16, #tpu.memory_space<vmem>>, %arg13: memref<128x128xbf16, #tpu.memory_space<vmem>>, %arg14: memref<128x128xf32, #tpu.memory_space<vmem>>) attributes {dimension_semantics = [#tpu.dimension_semantics<parallel>, #tpu.dimension_semantics<arbitrary>], iteration_bounds = array<i64: 3, 3>, scalar_prefetch = 2 : i64, scratch_operands = 1 : i64, tpu.core_type = #tpu.core_type<tc>, window_params = [{transform_indices = @transform_0, window_bounds = array<i64: 128, 128>}, {pipeline_mode = #tpu.pipeline_mode<synchronous>, transform_indices = @transform_1, window_bounds = array<i64: 1, 128>}, {pipeline_mode = #tpu.pipeline_mode<synchronous>, transform_indices = @transform_2, window_bounds = array<i64: 1, 128>}, {pipeline_mode = #tpu.pipeline_mode<synchronous>, transform_indices = @transform_3, window_bounds = array<i64: 128, 128>}, {pipeline_mode = #tpu.pipeline_mode<synchronous>, transform_indices = @transform_4, window_bounds = array<i64: 16, 128>}, {pipeline_mode = #tpu.pipeline_mode<synchronous>, transform_indices = @transform_5, window_bounds = array<i64: 1, 128>}, {transform_indices = @transform_6, window_bounds = array<i64: 1, 512>}, {transform_indices = @transform_7, window_bounds = array<i64: 512, 16>}, {transform_indices = @transform_8, window_bounds = array<i64: 128, 128>}, {transform_indices = @transform_9, window_bounds = array<i64: 128, 128>}]} {
    %c128_i32 = arith.constant 128 : i32
    %0 = arith.muli %arg0, %c128_i32 : i32
    %c0_i32 = arith.constant 0 : i32
    %1 = arith.cmpi eq, %arg1, %c0_i32 : i32
    %2 = arith.extui %1 : i1 to i32
    %c0_i32_0 = arith.constant 0 : i32
    %3 = arith.cmpi ne, %2, %c0_i32_0 : i32
    scf.if %3 {
      %c0 = arith.constant 0 : index
      %c0_4 = arith.constant 0 : index
      %17 = vector.load %arg4[%c0, %c0_4] : memref<128x128xf32, #tpu.memory_space<vmem>>, vector<128x128xf32>
      %18 = tpu.iota {dimensions = array<i32: 1>} : vector<128x128xi32>
      %c64_i32 = arith.constant 64 : i32
      %19 = vector.broadcast %c64_i32 : i32 to vector<128x128xi32>
      %20 = arith.cmpi slt, %18, %19 : vector<128x128xi32>
      %cst = arith.constant dense<0.000000e+00> : vector<128xf32>
      %21 = vector.multi_reduction <add>, %17, %cst [1] : vector<128x128xf32> to vector<128xf32>
      %22 = vector.shape_cast %21 : vector<128xf32> to vector<128x1xf32>
      %cst_5 = arith.constant 1.562500e-02 : f32
      %23 = vector.broadcast %cst_5 : f32 to vector<128x1xf32>
      %24 = arith.mulf %22, %23 : vector<128x1xf32>
      %25 = vector.broadcast %24 : vector<128x1xf32> to vector<128x128xf32>
      %26 = arith.subf %17, %25 : vector<128x128xf32>
      %cst_6 = arith.constant 0.000000e+00 : f32
      %27 = vector.broadcast %cst_6 : f32 to vector<128x128xf32>
      %28 = arith.select %20, %26, %27 : vector<128x128xi1>, vector<128x128xf32>
      %29 = arith.mulf %28, %28 : vector<128x128xf32>
      %cst_7 = arith.constant dense<0.000000e+00> : vector<128xf32>
      %30 = vector.multi_reduction <add>, %29, %cst_7 [1] : vector<128x128xf32> to vector<128xf32>
      %31 = vector.shape_cast %30 : vector<128xf32> to vector<128x1xf32>
      %cst_8 = arith.constant 1.562500e-02 : f32
      %32 = vector.broadcast %cst_8 : f32 to vector<128x1xf32>
      %33 = arith.mulf %31, %32 : vector<128x1xf32>
      %cst_9 = arith.constant 9.99999974E-6 : f32
      %34 = vector.broadcast %cst_9 : f32 to vector<128x1xf32>
      %35 = arith.addf %33, %34 : vector<128x1xf32>
      %36 = math.rsqrt %35 : vector<128x1xf32>
      %37 = vector.broadcast %36 : vector<128x1xf32> to vector<128x128xf32>
      %38 = arith.mulf %28, %37 : vector<128x128xf32>
      %c0_10 = arith.constant 0 : index
      %c0_11 = arith.constant 0 : index
      %39 = vector.load %arg5[%c0_10, %c0_11] : memref<1x128xf32, #tpu.memory_space<vmem>>, vector<1x128xf32>
      %40 = vector.broadcast %39 : vector<1x128xf32> to vector<128x128xf32>
      %41 = arith.mulf %38, %40 : vector<128x128xf32>
      %c0_12 = arith.constant 0 : index
      %c0_13 = arith.constant 0 : index
      %42 = vector.load %arg6[%c0_12, %c0_13] : memref<1x128xf32, #tpu.memory_space<vmem>>, vector<1x128xf32>
      %43 = vector.broadcast %42 : vector<1x128xf32> to vector<128x128xf32>
      %44 = arith.addf %41, %43 : vector<128x128xf32>
      %45 = arith.truncf %44 : vector<128x128xf32> to vector<128x128xbf16>
      %c0_14 = arith.constant 0 : index
      %c0_15 = arith.constant 0 : index
      %46 = vector.load %arg7[%c0_14, %c0_15] : memref<128x128xbf16, #tpu.memory_space<vmem>>, vector<128x128xbf16>
      %cst_16 = arith.constant dense<0.000000e+00> : vector<128x128xf32>
      %47 = tpu.matmul %45, %46, %cst_16 {dimension_numbers = #tpu.dot_dimension_numbers<[1], [0], [0], [1], [0, 0, 1, 1], [], []>} : vector<128x128xbf16>, vector<128x128xbf16>, vector<128x128xf32> -> vector<128x128xf32>
      %48 = arith.truncf %47 : vector<128x128xf32> to vector<128x128xbf16>
      %c0_17 = arith.constant 0 : index
      %c0_18 = arith.constant 0 : index
      %49 = vector.load %arg12[%c0_17, %c0_18] : memref<128x128xbf16, #tpu.memory_space<vmem>>, vector<128x128xbf16>
      tpu.vector_store %arg12[%c0_17, %c0_18], %48 {strides = array<i32>} : memref<128x128xbf16, #tpu.memory_space<vmem>>, vector<128x128xbf16>,
      %cst_19 = arith.constant 0.000000e+00 : f32
      %50 = vector.broadcast %cst_19 : f32 to vector<128x128xf32>
      %c0_20 = arith.constant 0 : index
      %c0_21 = arith.constant 0 : index
      %51 = vector.load %arg14[%c0_20, %c0_21] : memref<128x128xf32, #tpu.memory_space<vmem>>, vector<128x128xf32>
      tpu.vector_store %arg14[%c0_20, %c0_21], %50 {strides = array<i32>} : memref<128x128xf32, #tpu.memory_space<vmem>>, vector<128x128xf32>,
    } else {
    }
    %4 = arith.index_cast %arg1 : i32 to index
    %5 = memref.load %arg3[%4] : memref<3xi32, #tpu.memory_space<smem>>
    %6 = arith.cmpi sge, %5, %0 : i32
    %7 = arith.index_cast %arg1 : i32 to index
    %8 = memref.load %arg2[%7] : memref<3xi32, #tpu.memory_space<smem>>
    %c128_i32_1 = arith.constant 128 : i32
    %9 = arith.addi %0, %c128_i32_1 : i32
    %10 = arith.cmpi slt, %8, %9 : i32
    %11 = arith.andi %6, %10 : i1
    %12 = arith.extui %11 : i1 to i32
    %c0_i32_2 = arith.constant 0 : i32
    %13 = arith.cmpi ne, %12, %c0_i32_2 : i32
    scf.if %13 {
      %c0 = arith.constant 0 : index
      %c0_4 = arith.constant 0 : index
      %17 = vector.load %arg11[%c0, %c0_4] : memref<512x16xf32, #tpu.memory_space<vmem>>, vector<512x16xf32>
      %c0_5 = arith.constant 0 : index
      %c0_6 = arith.constant 0 : index
      %18 = vector.load %arg8[%c0_5, %c0_6] : memref<16x128xf32, #tpu.memory_space<vmem>>, vector<16x128xf32>
      %cst = arith.constant dense<0.000000e+00> : vector<512x128xf32>
      %19 = tpu.matmul %17, %18, %cst {dimension_numbers = #tpu.dot_dimension_numbers<[1], [0], [0], [1], [0, 0, 1, 1], [], []>} : vector<512x16xf32>, vector<16x128xf32>, vector<512x128xf32> -> vector<512x128xf32>
      %c0_7 = arith.constant 0 : index
      %c0_8 = arith.constant 0 : index
      %20 = vector.load %arg9[%c0_7, %c0_8] : memref<1x128xf32, #tpu.memory_space<vmem>>, vector<1x128xf32>
      %21 = vector.broadcast %20 : vector<1x128xf32> to vector<512x128xf32>
      %22 = arith.addf %19, %21 : vector<512x128xf32>
      %cst_9 = arith.constant 0.000000e+00 : f32
      %23 = vector.broadcast %cst_9 : f32 to vector<512x128xf32>
      %24 = arith.maximumf %22, %23 : vector<512x128xf32>
      %25 = arith.truncf %24 : vector<512x128xf32> to vector<512x128xbf16>
      %c0_10 = arith.constant 0 : index
      %c0_11 = arith.constant 0 : index
      %26 = vector.load %arg10[%c0_10, %c0_11] : memref<1x512xi32, #tpu.memory_space<vmem>>, vector<1x512xi32>
      %27 = tpu.iota {dimensions = array<i32: 0>} : vector<128x512xi32>
      %28 = vector.broadcast %0 : i32 to vector<128x512xi32>
      %29 = arith.addi %28, %27 : vector<128x512xi32>
      %30 = vector.broadcast %26 : vector<1x512xi32> to vector<128x512xi32>
      %31 = arith.cmpi eq, %29, %30 : vector<128x512xi32>
      %32 = arith.extui %31 : vector<128x512xi1> to vector<128x512xi32>
      %33 = arith.sitofp %32 : vector<128x512xi32> to vector<128x512xf32>
      %34 = arith.truncf %33 : vector<128x512xf32> to vector<128x512xbf16>
      %c0_12 = arith.constant 0 : index
      %c0_13 = arith.constant 0 : index
      %35 = vector.load %arg14[%c0_12, %c0_13] : memref<128x128xf32, #tpu.memory_space<vmem>>, vector<128x128xf32>
      %cst_14 = arith.constant dense<0.000000e+00> : vector<128x128xf32>
      %36 = tpu.matmul %34, %25, %cst_14 {dimension_numbers = #tpu.dot_dimension_numbers<[1], [0], [0], [1], [0, 0, 1, 1], [], []>} : vector<128x512xbf16>, vector<512x128xbf16>, vector<128x128xf32> -> vector<128x128xf32>
      %37 = arith.addf %35, %36 : vector<128x128xf32>
      %c0_15 = arith.constant 0 : index
      %c0_16 = arith.constant 0 : index
      %38 = vector.load %arg14[%c0_15, %c0_16] : memref<128x128xf32, #tpu.memory_space<vmem>>, vector<128x128xf32>
      tpu.vector_store %arg14[%c0_15, %c0_16], %37 {strides = array<i32>} : memref<128x128xf32, #tpu.memory_space<vmem>>, vector<128x128xf32>,
    } else {
    }
    %c2_i32 = arith.constant 2 : i32
    %14 = arith.cmpi eq, %arg1, %c2_i32 : i32
    %15 = arith.extui %14 : i1 to i32
    %c0_i32_3 = arith.constant 0 : i32
    %16 = arith.cmpi ne, %15, %c0_i32_3 : i32
    scf.if %16 {
      %c0 = arith.constant 0 : index
      %c0_4 = arith.constant 0 : index
      %17 = vector.load %arg14[%c0, %c0_4] : memref<128x128xf32, #tpu.memory_space<vmem>>, vector<128x128xf32>
      %18 = arith.truncf %17 : vector<128x128xf32> to vector<128x128xbf16>
      %c0_5 = arith.constant 0 : index
      %c0_6 = arith.constant 0 : index
      %19 = vector.load %arg13[%c0_5, %c0_6] : memref<128x128xbf16, #tpu.memory_space<vmem>>, vector<128x128xbf16>
      tpu.vector_store %arg13[%c0_5, %c0_6], %18 {strides = array<i32>} : memref<128x128xbf16, #tpu.memory_space<vmem>>, vector<128x128xbf16>,
    } else {
    }
    return
  }
  func.func @transform_0(%arg0: i32, %arg1: i32, %arg2: memref<3xi32, #tpu.memory_space<smem>>, %arg3: memref<3xi32, #tpu.memory_space<smem>>) -> (i32, i32) {
    %c0_i32 = arith.constant 0 : i32
    %c0_i32_0 = arith.constant 0 : i32
    return %arg0, %c0_i32 : i32, i32
  }
  func.func @transform_1(%arg0: i32, %arg1: i32, %arg2: memref<3xi32, #tpu.memory_space<smem>>, %arg3: memref<3xi32, #tpu.memory_space<smem>>) -> (i32, i32) {
    %c0_i32 = arith.constant 0 : i32
    %c0_i32_0 = arith.constant 0 : i32
    %c0_i32_1 = arith.constant 0 : i32
    return %c0_i32, %c0_i32_0 : i32, i32
  }
  func.func @transform_2(%arg0: i32, %arg1: i32, %arg2: memref<3xi32, #tpu.memory_space<smem>>, %arg3: memref<3xi32, #tpu.memory_space<smem>>) -> (i32, i32) {
    %c0_i32 = arith.constant 0 : i32
    %c0_i32_0 = arith.constant 0 : i32
    %c0_i32_1 = arith.constant 0 : i32
    return %c0_i32, %c0_i32_0 : i32, i32
  }
  func.func @transform_3(%arg0: i32, %arg1: i32, %arg2: memref<3xi32, #tpu.memory_space<smem>>, %arg3: memref<3xi32, #tpu.memory_space<smem>>) -> (i32, i32) {
    %c0_i32 = arith.constant 0 : i32
    %c0_i32_0 = arith.constant 0 : i32
    %c0_i32_1 = arith.constant 0 : i32
    return %c0_i32, %c0_i32_0 : i32, i32
  }
  func.func @transform_4(%arg0: i32, %arg1: i32, %arg2: memref<3xi32, #tpu.memory_space<smem>>, %arg3: memref<3xi32, #tpu.memory_space<smem>>) -> (i32, i32) {
    %c0_i32 = arith.constant 0 : i32
    %c0_i32_0 = arith.constant 0 : i32
    %c0_i32_1 = arith.constant 0 : i32
    return %c0_i32, %c0_i32_0 : i32, i32
  }
  func.func @transform_5(%arg0: i32, %arg1: i32, %arg2: memref<3xi32, #tpu.memory_space<smem>>, %arg3: memref<3xi32, #tpu.memory_space<smem>>) -> (i32, i32) {
    %c0_i32 = arith.constant 0 : i32
    %c0_i32_0 = arith.constant 0 : i32
    %c0_i32_1 = arith.constant 0 : i32
    return %c0_i32, %c0_i32_0 : i32, i32
  }
  func.func @transform_6(%arg0: i32, %arg1: i32, %arg2: memref<3xi32, #tpu.memory_space<smem>>, %arg3: memref<3xi32, #tpu.memory_space<smem>>) -> (i32, i32) {
    %c0_i32 = arith.constant 0 : i32
    %c0_i32_0 = arith.constant 0 : i32
    return %c0_i32, %arg1 : i32, i32
  }
  func.func @transform_7(%arg0: i32, %arg1: i32, %arg2: memref<3xi32, #tpu.memory_space<smem>>, %arg3: memref<3xi32, #tpu.memory_space<smem>>) -> (i32, i32) {
    %c0_i32 = arith.constant 0 : i32
    %c0_i32_0 = arith.constant 0 : i32
    return %arg1, %c0_i32 : i32, i32
  }
  func.func @transform_8(%arg0: i32, %arg1: i32, %arg2: memref<3xi32, #tpu.memory_space<smem>>, %arg3: memref<3xi32, #tpu.memory_space<smem>>) -> (i32, i32) {
    %c0_i32 = arith.constant 0 : i32
    %c0_i32_0 = arith.constant 0 : i32
    return %arg0, %c0_i32 : i32, i32
  }
  func.func @transform_9(%arg0: i32, %arg1: i32, %arg2: memref<3xi32, #tpu.memory_space<smem>>, %arg3: memref<3xi32, #tpu.memory_space<smem>>) -> (i32, i32) {
    %c0_i32 = arith.constant 0 : i32
    %c0_i32_0 = arith.constant 0 : i32
    return %arg0, %c0_i32 : i32, i32
  }
}

</mosaic_0001>

<bundles_post_ra>
// kernel: tpu_custom_call.1
= control target key start
LH: loop header
LB: loop body
LE: loop exit
PB: predicated region body
PF: predicated region fallthrough
CT: control target
= control target key end

     0   :  { %s4776_s0 = inlined_call_operand.vmem [shape: s32[3], index: 0, kind: input, shape index: {}]   ;;  %s4777_s2 = inlined_call_operand.vmem [shape: f32[384,128], index: 2, kind: input, shape index: {}]   ;;  %s4778_s3 = inlined_call_operand.vmem [shape: f32[1,128], index: 3, kind: input, shape index: {}]   ;;  %s4779_s4 = inlined_call_operand.vmem [shape: f32[1,128], index: 4, kind: input, shape index: {}]   ;;  %s4780_s5 = inlined_call_operand.vmem [shape: bf16[128,128], index: 5, kind: input, shape index: {}]   ;;  %s4781_s6 = inlined_call_operand.vmem [shape: f32[16,128], index: 6, kind: input, shape index: {}]   ;;  %s4782_s7 = inlined_call_operand.vmem [shape: f32[1,128], index: 7, kind: input, shape index: {}]   ;;  %s4783_s8 = inlined_call_operand.vmem [shape: s32[1,1536], index: 8, kind: input, shape index: {}]   ;;  %s4784_s9 = inlined_call_operand.vmem [shape: f32[1536,16], index: 9, kind: input, shape index: {}]   ;;  %s4785_s10 = inlined_call_operand.hbm [shape: bf16[384,128], index: 10, kind: output, shape index: {0}]   ;;  %s4786_s11 = inlined_call_operand.hbm [shape: bf16[384,128], index: 11, kind: output, shape index: {1}]   ;;  %s4787_s1 = inlined_call_operand.vmem [shape: s32[3], index: 1, kind: input, shape index: {}]  }
   0x1   :  { %s17_s19 = sshll.u32 %s4776_s0, 4  ;;  %s21_s22 = sshll.u32 %s4787_s1, 4  ;;  %s18_s19 = int_to_ptr.vmem [resolvable:$true] %s17_s19  ;;  %s22_s22 = int_to_ptr.vmem [resolvable:$true] %s21_s22 }
   0x2   :  { %s3359_s23 = scalar_lea.vmem %s18_s19, 16  ;;  %p3364_p1 = scmp.lt.s32.totalorder %s18_s19, %s18_s19 }
   0x3   :  { %p3360_p0 = scmp.ne.s32.totalorder %s18_s19, %s3359_s23  ;;  %p3365_p2 = scmp.lt.s32.totalorder %s3359_s23, %s3359_s23 }
   0x5   :  { %p3366_p3 = por %p3365_p2, %p3364_p1 }
   0x7   :  { %p3367_p4 = pnand %p3366_p3, %p3360_p0 }
   0x9   :  { %3370 = shalt.err (!%p3367_p4)  }
   0xa   :  { %s3513_s24 = smov [#allocation4]   ;;  %s3371_s25 = scalar_lea.vmem %s22_s22, 16 }
   0xb   :  { %20 = dma.vmem_to_smem %s18_s19, 16, %s3513_s24, [#allocation3] }
   0xc   :  { %p3372_p5 = scmp.ne.s32.totalorder %s22_s22, %s3371_s25  ;;  %p3376_p6 = scmp.lt.s32.totalorder %s22_s22, %s22_s22 }
   0xd   :  { %p3377_p7 = scmp.lt.s32.totalorder %s3371_s25, %s3371_s25 }
   0xf   :  { %p3378_p8 = por %p3377_p7, %p3376_p6 }
  0x11   :  { %p3379_p9 = pnand %p3378_p8, %p3372_p5 }
  0x13   :  { %3382 = shalt.err (!%p3379_p9)  }
  0x14   :  { %s3514_s0 = smov [#allocation5]  }
  0x15   :  { %24 = dma.vmem_to_smem %s22_s22, 16, %s3514_s0, [#allocation3] }
  0x16   :  { %3471 = dma.done.wait [#allocation3], 32 }
  0x17   :  { %3472 = vsyncadd [#allocation3], 4294967264 }
  0x18   :  { %26 = sfence }
  0x19   :  { %27 = vsyncpa [#allocation7], 0 }
  0x1a   :  { %29 = vsyncpa [#allocation7 + $0x1], 0 }
  0x1b   :  { %30 = vsyncpa [#allocation9], 0 }
  0x1c   :  { %32 = vsyncpa [#allocation9 + $0x1], 0  ;;  %s3587_s1 = smov 0   ;;  %s3589_s26 = smov 0  }
  0x1d   :  { %s3591_s27 = smov 0   ;;  %s3593_s28 = smov 0  }
  0x1e   :  { %s3595_s29 = smov 0   ;;  %s3597_s30 = smov 0  }
  0x1f   :  { %s3599_s12 = smov 0   ;;  %s3601_s13 = smov 0  }
  0x20 LB: > { %4794 = sst [smem:[#allocation13_spill]] %s3487_s26  ;;  %s2473_s14 = sadd.s32 4294967295, %s3511_s13   ;;  %s3511_s13 = sphi %s3601_s13, %s38_s13   ;;  %s3507_s12 = sphi %s3599_s12, %s4892_s12   ;;  %s3503_s30 = sphi %s3597_s30, %s4891_s30   ;;  %s3499_s29 = sphi %s3595_s29, %s4890_s29   ;;  %s3495_s28 = sphi %s3593_s28, %s4889_s28   ;;  %s3491_s27 = sphi %s3591_s27, %s4888_s27   ;;  %s3487_s26 = sphi %s3589_s26, %s4887_s26   ;;  %s3483_s1 = sphi %s3587_s1, %s4886_s1  }
  0x21   : > { %4795 = sst [smem:[#allocation14_spill]] %s3491_s27  ;;  %s2474_s15 = sadd.s32 4294967294, %s3511_s13  }
  0x22   : > { %4796 = sst [smem:[#allocation15_spill]] %s3503_s30  ;;  %s47_s16 = sadd.s32 1, %s3503_s30 }
  0x23   : > { %4797 = sst [smem:[#allocation16_spill]] %s3507_s12  ;;  %p48_p10 = scmp.ge.s32.totalorder %s47_s16, 3 }
  0x24   : > { %s50_s17 = sadd.s32 1, %s3507_s12  ;;  %p250_p11 = scmp.ne.s32.totalorder %s3491_s27, %s3487_s26 }
  0x25   : > { %p251_p12 = scmp.eq.s32.totalorder %s2473_s14, 8  ;;  %s4894_s16 = smov (%p48_p10, %s47_s16), 0 }
  0x26   : > { %4798 = sst [smem:[#allocation17_spill]] %s4894_s16  ;;  %s4896_s17 = smov (!%p48_p10, %s50_s17), %s3507_s12 }
  0x27   : > { %p3636_p13 = por %p251_p12, %p250_p11  ;;  %p256_p0 = scmp.ne.s32.totalorder %s3487_s26, %s3483_s1 }
  0x28   : > { %p52_p1 = scmp.ge.s32.totalorder %s4896_s17, 3  ;;  %p257_p2 = scmp.eq.s32.totalorder %s2474_s15, 8 }
  0x29   : > { %p2477_p3 = scmp.ge.s32.totalorder %s3511_s13, 1  ;;  %p342_p4 = scmp.lt.s32.totalorder %s3511_s13, 10 }
  0x2a   : > { %s4898_s17 = smov (%p52_p1, %s4896_s17), 0  ;;  %p3646_p5 = por %p257_p2, %p256_p0 }
  0x2b   : > { %4800 = sst [smem:[#allocation18_spill]] %s4898_s17  ;;  %p343_p6 = pnand %p2477_p3, %p342_p4 }
  0x2c   : > { %s4801_s19 = scalar_select %p3646_p5, 1, 0 }
  0x2d   : > { %s237_s20 = ssub.s32 %s3507_s12, %s4898_s17  ;;  %s240_s21 = sadd.s32 1, %s3491_s27 }
  0x2e   : > { %4802 = sst [smem:[#allocation19_spill]] %s4801_s19  ;;  %p238_p7 = scmp.eq.s32.totalorder %s237_s20, 0 }
  0x2f   : > { %346 = sbr.rel (%p343_p6) target bundleno = 1325 (0x52d), region = 52  ;;  %s3657_s23 = sand.u32 (!%p343_p6), 1, %s3487_s26  }
  0x30   : > { %s3654_s22 = scalar_select %p238_p7, %s3491_s27, %s240_s21  }
  0x31   : > { %s2480_s24 = sshll.u32 (!%p343_p6), %s3499_s29, 4  ;;  %s2478_s25 = sshll.u32 (!%p343_p6), %s3657_s23, 6 }
  0x32   : > { %4803 = sst [smem:[#allocation20_spill]] %s3654_s22  ;;  %p393_p8 = scmp.lt.s32.totalorder (!%p343_p6), %s2480_s24, 47 }
  0x33   : > { %s2482_s0 = sshll.u32 (!%p343_p6), %s3495_s28, 2  ;;  %s2483_s14 = sshll.u32 (!%p343_p6), %s3495_s28, 6 }
  0x34   : > { %p399_p9 = scmp.lt.s32.totalorder (!%p343_p6), %s2482_s0, 11  ;;  %p404_p10 = scmp.lt.s32.totalorder (!%p343_p6), %s2483_s14, 191 }
  0x35   : > { %s3675_s22 = sshll.u32 (!%p343_p6), %s3499_s29, 7  ;;  %s3682_s20 = scalar_lea.vmem (!%p343_p6), [#allocation6], %s2478_s25 }
  0x36   : > { %s4900_s24 = smov (!%p393_p8, %s2480_s24), 47  ;;  %s4902_s0 = smov (!%p399_p9, %s2482_s0), 11 }
  0x37   : > { %s2481_s15 = sshll.u32 %s4900_s24, 3  ;;  %s4904_s14 = smov (!%p404_p10, %s2483_s14), 191 }
  0x38   : > { %s3666_s17 = scalar_lea.vmem %s4777_s2, %s2481_s15  ;;  %s401_s30 = scalar_lea.vmem %s4783_s8, %s4902_s0 }
  0x39   : > { %s2484_s27 = sshll.u32 %s4904_s14, 3  ;;  %s3684_s15 = scalar_lea.vmem [#allocation8], %s2478_s25 }
  0x3a   : > { %s3680_s19 = scalar_lea.vmem %s4784_s9, %s2484_s27  ;;  %p2486_p11 = scmp.ne.s32.totalorder %s3495_s28, 0 }
  0x3b   : > { %v417_v0 = vld [vmem:[%s3666_s17] sm:$0xff] (!%p2486_p11)  ;;  %v418_v2 = vld [vmem:[%s3666_s17 + $0x8] sm:$0xff] (!%p2486_p11)  ;;  %v3692_v4 = vld [vmem:[%s3666_s17 + $0x10] sm:$0xff] (!%p2486_p11)  ;;  %v433_v16 = vlaneseq (!%p2486_p11) }
  0x3c   : > { %416 = sbr.rel (%p2486_p11) target bundleno = 624 (0x270), region = 56  ;;  %v425_v1 = vld [vmem:[%s3666_s17 + $0x40] sm:$0xff] (!%p2486_p11)  ;;  %436 = vadd.xlane.f32.xlu0 (!%p2486_p11), %v417_v0  ;;  %v426_v3 = vld [vmem:[%s3666_s17 + $0x48] sm:$0xff] (!%p2486_p11)  ;;  %v420_v5 = vld [vmem:[%s3666_s17 + $0x18] sm:$0xff] (!%p2486_p11) }
  0x3d   : > { %452 = vadd.xlane.f32.xlu1 (!%p2486_p11), %v425_v1  ;;  %v3696_v6 = vld [vmem:[%s3666_s17 + $0x50] sm:$0xff] (!%p2486_p11)  ;;  %v3700_v7 = vld [vmem:[%s3666_s17 + $0x58] sm:$0xff] (!%p2486_p11)  ;;  %v3705_v8 = vld [vmem:[%s3666_s17 + $0x20] sm:$0xff] (!%p2486_p11)  ;;  %v3736_v17 = vand.u32 (!%p2486_p11), 127, %v433_v16 }
  0x3e   : > { %v3708_v9 = vld [vmem:[%s3666_s17 + $0x28] sm:$0xff] (!%p2486_p11)  ;;  %v3713_v10 = vld [vmem:[%s3666_s17 + $0x60] sm:$0xff] (!%p2486_p11)  ;;  %v3721_v12 = vld [vmem:[%s3666_s17 + $0x30] sm:$0xff] (!%p2486_p11) }
  0x3f   : > { %v3716_v11 = vld [vmem:[%s3666_s17 + $0x68] sm:$0xff] (!%p2486_p11)  ;;  %v3724_v13 = vld [vmem:[%s3666_s17 + $0x38] sm:$0xff] (!%p2486_p11)  ;;  %v3729_v14 = vld [vmem:[%s3666_s17 + $0x70] sm:$0xff] (!%p2486_p11)  ;;  %vm435_vm0 = vcmp.lt.s32.totalorder (!%p2486_p11), %v3736_v17, 64 }
  0x40   : > { %438 = vadd.xlane.f32.xlu0 (!%p2486_p11), %v418_v2  ;;  %v3732_v15 = vld [vmem:[%s3666_s17 + $0x78] sm:$0xff] (!%p2486_p11)  ;;  %v3323_v17 = vld [vmem:[%s4780_s5 + $0x20] sm:$0xff] (!%p2486_p11)  }
  0x41   : > { %454 = vadd.xlane.f32.xlu1 (!%p2486_p11), %v426_v3 }
  0x44   : > { %440 = vadd.xlane.f32.xlu0 %v3692_v4 }
  0x45   : > { %442 = vadd.xlane.f32.xlu1 %v420_v5 }
  0x48   : > { %456 = vadd.xlane.f32.xlu0 %v3696_v6 }
  0x49   : > { %458 = vadd.xlane.f32.xlu1 %v3700_v7 }
  0x4c   : > { %444 = vadd.xlane.f32.xlu0 %v3705_v8 }
  0x4d   : > { %446 = vadd.xlane.f32.xlu1 %v3708_v9 }
  0x50   : > { %460 = vadd.xlane.f32.xlu0 %v3713_v10 }
  0x51   : > { %462 = vadd.xlane.f32.xlu1 %v3716_v11 }
  0x54   : > { %448 = vadd.xlane.f32.xlu0 %v3721_v12 }
  0x55   : > { %450 = vadd.xlane.f32.xlu1 %v3724_v13 }
  0x58   : > { %464 = vadd.xlane.f32.xlu0 %v3729_v14 }
  0x59   : > { %466 = vadd.xlane.f32.xlu1 %v3732_v15 }
  0xc9   : > { %v437_v18 = vpop.xlane.xlu0 %436 }
  0xca   : > { %v453_v19 = vpop.xlane.xlu1 %452  ;;  %v468_v20 = vmul.f32 0.015625, %v437_v18 }
  0xcb   : > { %v476_v21 = vmul.f32 0.015625, %v453_v19 }
  0xcc   : > { %v484_v22 = vsub.f32 %v417_v0, %v468_v20 }
  0xcd   : > { %v492_v23 = vsub.f32 %v425_v1, %v476_v21  ;;  %v439_v24 = vpop.xlane.xlu0 %438 }
  0xce   : > { %v455_v25 = vpop.xlane.xlu1 %454  ;;  %v469_v26 = vmul.f32 0.015625, %v439_v24  ;;  %v3741_v28 = vsel %vm435_vm0, %v484_v22, 0.0 }
  0xcf   : > { %v477_v27 = vmul.f32 0.015625, %v455_v25  ;;  %v3745_v29 = vsel %vm435_vm0, %v492_v23, 0.0  ;;  %v516_v30 = vmul.f32 %v3741_v28, %v3741_v28 }
  0xd0   : > { %v485_v31 = vsub.f32 %v418_v2, %v469_v26  ;;  %v524_v35 = vmul.f32 %v3745_v29, %v3745_v29 }
  0xd1   : > { %v493_v32 = vsub.f32 %v426_v3, %v477_v27  ;;  %532 = vadd.xlane.f32.xlu0 %v516_v30  ;;  %v441_v33 = vpop.xlane.xlu0 %440  ;;  %v3320_v30 = vld [vmem:[%s4780_s5 + $0x8] sm:$0xff]  }
  0xd2   : > { %v443_v34 = vpop.xlane.xlu1 %442  ;;  %v470_v36 = vmul.f32 0.015625, %v441_v33  ;;  %v3753_v38 = vsel %vm435_vm0, %v485_v31, 0.0 }
  0xd3   : > { %v471_v37 = vmul.f32 0.015625, %v443_v34  ;;  %v3757_v39 = vsel %vm435_vm0, %v493_v32, 0.0  ;;  %v517_v40 = vmul.f32 %v3753_v38, %v3753_v38 }
  0xd4   : > { %v486_v41 = vsub.f32 %v3692_v4, %v470_v36  ;;  %v525_v45 = vmul.f32 %v3757_v39, %v3757_v39 }
  0xd5   : > { %v487_v42 = vsub.f32 %v420_v5, %v471_v37  ;;  %548 = vadd.xlane.f32.xlu0 %v524_v35  ;;  %534 = vadd.xlane.f32.xlu1 %v517_v40  ;;  %v457_v43 = vpop.xlane.xlu0 %456  ;;  %v3321_v37 = vld [vmem:[%s4780_s5 + $0x10] sm:$0xff]  }
  0xd6   : > { %v459_v44 = vpop.xlane.xlu1 %458  ;;  %v478_v46 = vmul.f32 0.015625, %v457_v43  ;;  %v3766_v48 = vsel %vm435_vm0, %v486_v41, 0.0  ;;  %v3324_v43 = vld [vmem:[%s4780_s5 + $0x28] sm:$0xff]  }
  0xd7   : > { %v479_v47 = vmul.f32 0.015625, %v459_v44  ;;  %v3770_v49 = vsel %vm435_vm0, %v487_v42, 0.0  ;;  %v518_v50 = vmul.f32 %v3766_v48, %v3766_v48  ;;  %v3322_v42 = vld [vmem:[%s4780_s5 + $0x18] sm:$0xff]   ;;  %v3325_v44 = vld [vmem:[%s4780_s5 + $0x30] sm:$0xff]  }
  0xd8   : > { %v494_v51 = vsub.f32 %v3696_v6, %v478_v46  ;;  %v519_v55 = vmul.f32 %v3770_v49, %v3770_v49 }
  0xd9   : > { %v495_v52 = vsub.f32 %v3700_v7, %v479_v47  ;;  %550 = vadd.xlane.f32.xlu1 %v525_v45  ;;  %536 = vadd.xlane.f32.xlu0 %v518_v50  ;;  %v445_v53 = vpop.xlane.xlu0 %444  ;;  %v3326_v45 = vld [vmem:[%s4780_s5 + $0x38] sm:$0xff]  }
  0xda   : > { %v447_v54 = vpop.xlane.xlu1 %446  ;;  %v472_v56 = vmul.f32 0.015625, %v445_v53  ;;  %v3780_v58 = vsel %vm435_vm0, %v494_v51, 0.0 }
  0xdb   : > { %v473_v57 = vmul.f32 0.015625, %v447_v54  ;;  %v3784_v59 = vsel %vm435_vm0, %v495_v52, 0.0  ;;  %v526_v60 = vmul.f32 %v3780_v58, %v3780_v58 }
  0xdc   : > { %v488_v61 = vsub.f32 %v3705_v8, %v472_v56  ;;  %v527_v1 = vmul.f32 %v3784_v59, %v3784_v59 }
  0xdd   : > { %v489_v62 = vsub.f32 %v3708_v9, %v473_v57  ;;  %538 = vadd.xlane.f32.xlu1 %v519_v55  ;;  %552 = vadd.xlane.f32.xlu0 %v526_v60  ;;  %v461_v63 = vpop.xlane.xlu0 %460  ;;  %v3319_v9 = vld [vmem:[%s4780_s5] sm:$0xff]  }
  0xde   : > { %v463_v0 = vpop.xlane.xlu1 %462  ;;  %v480_v2 = vmul.f32 0.015625, %v461_v63  ;;  %v3794_v4 = vsel %vm435_vm0, %v488_v61, 0.0  ;;  %3069 = vmatprep.subr.bf16.mxu0 %v3319_v9  ;;  %3205 = vmatprep.subr.bf16.mxu1 %v3319_v9 }
  0xdf   : > { %v481_v3 = vmul.f32 0.015625, %v463_v0  ;;  %v3798_v5 = vsel %vm435_vm0, %v489_v62, 0.0  ;;  %v520_v6 = vmul.f32 %v3794_v4, %v3794_v4  ;;  %3070 = vmatpush3.bf16.msra.mxu0 %v3319_v9  ;;  %3213 = vmatpush3.bf16.msra.mxu1 %v3319_v9 }
  0xe0   : > { %v496_v7 = vsub.f32 %v3713_v10, %v480_v2  ;;  %v521_v19 = vmul.f32 %v3798_v5, %v3798_v5  ;;  %3071 = vmatprep.subr.bf16.mxu0 %v3320_v30  ;;  %3206 = vmatprep.subr.bf16.mxu1 %v3320_v30 }
  0xe1   : > { %v497_v8 = vsub.f32 %v3716_v11, %v481_v3  ;;  %554 = vadd.xlane.f32.xlu1 %v527_v1  ;;  %540 = vadd.xlane.f32.xlu0 %v520_v6  ;;  %v449_v16 = vpop.xlane.xlu0 %448 }
  0xe2   : > { %v451_v18 = vpop.xlane.xlu1 %450  ;;  %v474_v20 = vmul.f32 0.015625, %v449_v16  ;;  %v3811_v22 = vsel %vm435_vm0, %v496_v7, 0.0 }
  0xe3   : > { %v475_v21 = vmul.f32 0.015625, %v451_v18  ;;  %v3815_v10 = vsel %vm435_vm0, %v497_v8, 0.0  ;;  %v528_v11 = vmul.f32 %v3811_v22, %v3811_v22  ;;  %3072 = vmatpush3.bf16.msra.mxu0 %v3320_v30  ;;  %3214 = vmatpush3.bf16.msra.mxu1 %v3320_v30 }
  0xe4   : > { %v490_v23 = vsub.f32 %v3721_v12, %v474_v20  ;;  %v529_v27 = vmul.f32 %v3815_v10, %v3815_v10  ;;  %3073 = vmatprep.subr.bf16.mxu0 %v3321_v37  ;;  %3207 = vmatprep.subr.bf16.mxu1 %v3321_v37 }
  0xe5   : > { %v491_v24 = vsub.f32 %v3724_v13, %v475_v21  ;;  %542 = vadd.xlane.f32.xlu1 %v521_v19  ;;  %556 = vadd.xlane.f32.xlu0 %v528_v11  ;;  %v465_v25 = vpop.xlane.xlu0 %464  ;;  %v3874_v11 = vld [vmem:[%s4778_s3] ss:$0 sm:$0xff] }
  0xe6   : > { %v467_v26 = vpop.xlane.xlu1 %466  ;;  %v482_v31 = vmul.f32 0.015625, %v465_v25  ;;  %v3828_v33 = vsel %vm435_vm0, %v490_v23, 0.0 }
  0xe7   : > { %v483_v32 = vmul.f32 0.015625, %v467_v26  ;;  %v3832_v12 = vsel %vm435_vm0, %v491_v24, 0.0  ;;  %v522_v13 = vmul.f32 %v3828_v33, %v3828_v33  ;;  %3074 = vmatpush3.bf16.msra.mxu0 %v3321_v37  ;;  %3215 = vmatpush3.bf16.msra.mxu1 %v3321_v37 }
  0xe8   : > { %v498_v34 = vsub.f32 %v3729_v14, %v482_v31  ;;  %v523_v36 = vmul.f32 %v3832_v12, %v3832_v12  ;;  %3075 = vmatprep.subr.bf16.mxu0 %v3322_v42  ;;  %3208 = vmatprep.subr.bf16.mxu1 %v3322_v42 }
  0xe9   : > { %v499_v35 = vsub.f32 %v3732_v15, %v483_v32  ;;  %558 = vadd.xlane.f32.xlu1 %v529_v27  ;;  %544 = vadd.xlane.f32.xlu0 %v522_v13 }
  0xea   : > { %v3845_v40 = vsel %vm435_vm0, %v498_v34, 0.0  ;;  %v3881_v34 = vld [vmem:[%s4779_s4] ss:$0 sm:$0xff] }
  0xeb   : > { %v3849_v14 = vsel %vm435_vm0, %v499_v35, 0.0  ;;  %v530_v15 = vmul.f32 %v3845_v40, %v3845_v40  ;;  %3076 = vmatpush3.bf16.msra.mxu0 %v3322_v42  ;;  %3216 = vmatpush3.bf16.msra.mxu1 %v3322_v42 }
  0xec   : > { %v531_v41 = vmul.f32 %v3849_v14, %v3849_v14  ;;  %3077 = vmatprep.subr.bf16.mxu0 %v3323_v17  ;;  %3209 = vmatprep.subr.bf16.mxu1 %v3323_v17 }
  0xed   : > { %546 = vadd.xlane.f32.xlu1 %v523_v36  ;;  %560 = vadd.xlane.f32.xlu0 %v530_v15 }
  0xef   : > { %3078 = vmatpush3.bf16.msra.mxu0 %v3323_v17  ;;  %3217 = vmatpush3.bf16.msra.mxu1 %v3323_v17 }
  0xf0   : > { %3079 = vmatprep.subr.bf16.mxu0 %v3324_v43  ;;  %3210 = vmatprep.subr.bf16.mxu1 %v3324_v43 }
  0xf1   : > { %562 = vadd.xlane.f32.xlu1 %v531_v41 }
  0xf3   : > { %3080 = vmatpush3.bf16.msra.mxu0 %v3324_v43  ;;  %3218 = vmatpush3.bf16.msra.mxu1 %v3324_v43 }
  0xf4   : > { %3081 = vmatprep.subr.bf16.mxu0 %v3325_v44  ;;  %3211 = vmatprep.subr.bf16.mxu1 %v3325_v44 }
  0xf7   : > { %3082 = vmatpush3.bf16.msra.mxu0 %v3325_v44  ;;  %3219 = vmatpush3.bf16.msra.mxu1 %v3325_v44 }
  0xf8   : > { %3083 = vmatprep.subr.bf16.mxu0 %v3326_v45  ;;  %3212 = vmatprep.subr.bf16.mxu1 %v3326_v45 }
  0xfb   : > { %3084 = vmatpush3.bf16.msra.mxu0 %v3326_v45  ;;  %3220 = vmatpush3.bf16.msra.mxu1 %v3326_v45 }
 0x15e   : > { %v533_v46 = vpop.xlane.xlu0 %532 }
 0x15f   : > { %v564_v47 = vmul.f32 0.015625, %v533_v46 }
 0x161   : > { %v580_v50 = vadd.f32 1e-05, %v564_v47 }
 0x162   : > { %v535_v51 = vpop.xlane.xlu1 %534  ;;  %v549_v52 = vpop.xlane.xlu0 %548 }
 0x163   : > { %3327 = vrsqrt.f32 %v580_v50  ;;  %v565_v53 = vmul.f32 0.015625, %v535_v51  ;;  %v572_v54 = vmul.f32 0.015625, %v549_v52 }
 0x165   : > { %v581_v55 = vadd.f32 1e-05, %v565_v53  ;;  %v588_v56 = vadd.f32 1e-05, %v572_v54 }
 0x166   : > { %v551_v57 = vpop.xlane.xlu1 %550  ;;  %v537_v60 = vpop.xlane.xlu0 %536 }
 0x167   : > { %3329 = vrsqrt.f32 %v581_v55  ;;  %v573_v61 = vmul.f32 0.015625, %v551_v57  ;;  %v566_v62 = vmul.f32 0.015625, %v537_v60 }
 0x168   : > { %3331 = vrsqrt.f32 %v588_v56 }
 0x169   : > { %v589_v63 = vadd.f32 1e-05, %v573_v61  ;;  %v582_v0 = vadd.f32 1e-05, %v566_v62 }
 0x16a   : > { %v539_v1 = vpop.xlane.xlu1 %538  ;;  %v553_v2 = vpop.xlane.xlu0 %552 }
 0x16b   : > { %3333 = vrsqrt.f32 %v589_v63  ;;  %v567_v3 = vmul.f32 0.015625, %v539_v1  ;;  %v574_v6 = vmul.f32 0.015625, %v553_v2 }
 0x16c   : > { %3335 = vrsqrt.f32 %v582_v0 }
 0x16d   : > { %v3328_v7 = vpop.eup %3327  ;;  %v583_v8 = vadd.f32 1e-05, %v567_v3  ;;  %v590_v9 = vadd.f32 1e-05, %v574_v6 }
 0x16e   : > { %v555_v16 = vpop.xlane.xlu1 %554  ;;  %v541_v18 = vpop.xlane.xlu0 %540  ;;  %v612_v19 = vmul.f32 %v3328_v7, %v3741_v28 }
 0x16f   : > { %3337 = vrsqrt.f32 %v583_v8  ;;  %v575_v20 = vmul.f32 0.015625, %v555_v16  ;;  %v568_v21 = vmul.f32 0.015625, %v541_v18 }
 0x170   : > { %3339 = vrsqrt.f32 %v590_v9  ;;  %v635_v32 = vmul.f32 %v3874_v11, %v612_v19 }
 0x171   : > { %v3330_v23 = vpop.eup %3329  ;;  %v591_v24 = vadd.f32 1e-05, %v575_v20  ;;  %v584_v25 = vadd.f32 1e-05, %v568_v21 }
 0x172   : > { %v3332_v26 = vpop.eup %3331  ;;  %v543_v27 = vpop.xlane.xlu1 %542  ;;  %v613_v31 = vmul.f32 %v3330_v23, %v3753_v38  ;;  %v658_v43 = vadd.f32 %v3881_v34, %v635_v32 }
 0x173   : > { %v557_v30 = vpop.xlane.xlu0 %556  ;;  %3341 = vrsqrt.f32 %v591_v24  ;;  %v569_v28 = vmul.f32 0.015625, %v543_v27  ;;  %v620_v35 = vmul.f32 %v3332_v26, %v3745_v29 }
 0x174   : > { %v576_v13 = vmul.f32 0.015625, %v557_v30  ;;  %3343 = vrsqrt.f32 %v584_v25  ;;  %v636_v36 = vmul.f32 %v3874_v11, %v613_v31 }
 0x175   : > { %v3334_v37 = vpop.eup %3333  ;;  %v585_v15 = vadd.f32 1e-05, %v569_v28  ;;  %v643_v46 = vmul.f32 %v3874_v11, %v620_v35 }
 0x176   : > { %v592_v41 = vadd.f32 1e-05, %v576_v13  ;;  %v3336_v42 = vpop.eup %3335  ;;  %v559_v38 = vpop.xlane.xlu1 %558  ;;  %v659_v44 = vadd.f32 %v3881_v34, %v636_v36  ;;  %v621_v45 = vmul.f32 %v3334_v37, %v3757_v39 }
 0x177   : > { %v545_v17 = vpop.xlane.xlu0 %544  ;;  %3345 = vrsqrt.f32 %v585_v15  ;;  %v577_v47 = vmul.f32 0.015625, %v559_v38  ;;  %v614_v52 = vmul.f32 %v3336_v42, %v3766_v48  ;;  %v666_v39 = vadd.f32 %v3881_v34, %v643_v46 }
 0x178   : > { %v570_v29 = vmul.f32 0.015625, %v545_v17  ;;  %3347 = vrsqrt.f32 %v592_v41  ;;  %v674_v50 = vpack.c.bf16 %v659_v44, %v658_v43  ;;  %v644_v51 = vmul.f32 %v3874_v11, %v621_v45 }
 0x179   : > { %v3338_v53 = vpop.eup %3337  ;;  %v593_v54 = vadd.f32 1e-05, %v577_v47  ;;  %v637_v63 = vmul.f32 %v3874_v11, %v614_v52 }
 0x17a   : > { %v586_v55 = vadd.f32 1e-05, %v570_v29  ;;  %v3340_v56 = vpop.eup %3339  ;;  %v547_v57 = vpop.xlane.xlu1 %546  ;;  %3085 = vmatprep.mubr.bf16.mxu0 %v674_v50  ;;  %v667_v61 = vadd.f32 %v3881_v34, %v644_v51  ;;  %v615_v62 = vmul.f32 %v3338_v53, %v3770_v49 }
 0x17b   : > { %v561_v60 = vpop.xlane.xlu0 %560  ;;  %3349 = vrsqrt.f32 %v593_v54  ;;  %v571_v0 = vmul.f32 0.015625, %v547_v57  ;;  %v622_v48 = vmul.f32 %v3340_v56, %v3780_v58  ;;  %v660_v18 = vadd.f32 %v3881_v34, %v637_v63 }
 0x17c   : > { %v578_v1 = vmul.f32 0.015625, %v561_v60  ;;  %3351 = vrsqrt.f32 %v586_v55  ;;  %v678_v2 = vpack.c.bf16 %v667_v61, %v666_v39  ;;  %v638_v3 = vmul.f32 %v3874_v11, %v615_v62 }
 0x17d   : > { %v3342_v6 = vpop.eup %3341  ;;  %v587_v7 = vadd.f32 1e-05, %v571_v0  ;;  %v645_v20 = vmul.f32 %v3874_v11, %v622_v48  ;;  %v3515_v60 = vmov 0.0  }
 0x17e   : > { %v594_v8 = vadd.f32 1e-05, %v578_v1  ;;  %v3344_v9 = vpop.eup %3343  ;;  %v563_v16 = vpop.xlane.xlu1 %562  ;;  %3093 = vmatprep.mubr.bf16.mxu1 %v678_v2  ;;  %v661_v49 = vadd.f32 %v3881_v34, %v638_v3  ;;  %v623_v19 = vmul.f32 %v3342_v6, %v3784_v59  ;;  %923 = vst [vmem:[#allocation2] sm:$0xff] %v3515_v60  ;;  %924 = vst [vmem:[#allocation2 + $0x8] sm:$0xff] %v3515_v60 }
 0x17f   : > { %3353 = vrsqrt.f32 %v587_v7  ;;  %v579_v58 = vmul.f32 0.015625, %v563_v16  ;;  %v616_v21 = vmul.f32 %v3344_v9, %v3794_v4  ;;  %v668_v30 = vadd.f32 %v3881_v34, %v645_v20  ;;  %925 = vst [vmem:[#allocation2 + $0x10] sm:$0xff] %v3515_v60  ;;  %926 = vst [vmem:[#allocation2 + $0x18] sm:$0xff] %v3515_v60 }
 0x180   : > { %3355 = vrsqrt.f32 %v594_v8  ;;  %v675_v23 = vpack.c.bf16 %v661_v49, %v660_v18  ;;  %v646_v24 = vmul.f32 %v3874_v11, %v623_v19  ;;  %927 = vst [vmem:[#allocation2 + $0x20] sm:$0xff] %v3515_v60  ;;  %928 = vst [vmem:[#allocation2 + $0x28] sm:$0xff] %v3515_v60 }
 0x181   : > { %v3346_v25 = vpop.eup %3345  ;;  %v595_v26 = vadd.f32 1e-05, %v579_v58  ;;  %v639_v32 = vmul.f32 %v3874_v11, %v616_v21  ;;  %929 = vst [vmem:[#allocation2 + $0x30] sm:$0xff] %v3515_v60  ;;  %930 = vst [vmem:[#allocation2 + $0x38] sm:$0xff] %v3515_v60 }
 0x182   : > { %v3348_v27 = vpop.eup %3347  ;;  %3086 = vmatmul.mubr.bf16.vlgmr.msra.gmra.mrb[0].mxu0 %v675_v23  ;;  %v669_v31 = vadd.f32 %v3881_v34, %v646_v24  ;;  %v617_v59 = vmul.f32 %v3346_v25, %v3798_v5  ;;  %931 = vst [vmem:[#allocation2 + $0x40] sm:$0xff] %v3515_v60  ;;  %932 = vst [vmem:[#allocation2 + $0x48] sm:$0xff] %v3515_v60 }
 0x183   : > { %3357 = vrsqrt.f32 %v595_v26  ;;  %v624_v28 = vmul.f32 %v3348_v27, %v3811_v22  ;;  %v662_v37 = vadd.f32 %v3881_v34, %v639_v32  ;;  %933 = vst [vmem:[#allocation2 + $0x50] sm:$0xff] %v3515_v60  ;;  %934 = vst [vmem:[#allocation2 + $0x58] sm:$0xff] %v3515_v60 }
 0x184   : > { %v679_v4 = vpack.c.bf16 %v669_v31, %v668_v30  ;;  %v640_v13 = vmul.f32 %v3874_v11, %v617_v59  ;;  %935 = vst [vmem:[#allocation2 + $0x60] sm:$0xff] %v3515_v60  ;;  %936 = vst [vmem:[#allocation2 + $0x68] sm:$0xff] %v3515_v60 }
 0x185   : > { %v3350_v35 = vpop.eup %3349  ;;  %v647_v42 = vmul.f32 %v3874_v11, %v624_v28  ;;  %937 = vst [vmem:[#allocation2 + $0x70] sm:$0xff] %v3515_v60  ;;  %938 = vst [vmem:[#allocation2 + $0x78] sm:$0xff] %v3515_v60 }
 0x186   : > { %v3352_v36 = vpop.eup %3351  ;;  %3094 = vmatmul.mubr.bf16.vlgmr.msra.gmra.mrb[0].mxu1 %v679_v4  ;;  %v663_v15 = vadd.f32 %v3881_v34, %v640_v13  ;;  %v625_v41 = vmul.f32 %v3350_v35, %v3815_v10 }
 0x187   : > { %v618_v5 = vmul.f32 %v3352_v36, %v3828_v33  ;;  %v670_v44 = vadd.f32 %v3881_v34, %v647_v42 }
 0x188   : > { %v676_v38 = vpack.c.bf16 %v663_v15, %v662_v37  ;;  %v648_v17 = vmul.f32 %v3874_v11, %v625_v41 }
 0x189   : > { %v3354_v22 = vpop.eup %3353  ;;  %v641_v47 = vmul.f32 %v3874_v11, %v618_v5 }
 0x18a   : > { %v3356_v43 = vpop.eup %3355  ;;  %3089 = vmatprep.mubr.bf16.mxu0 %v676_v38  ;;  %v671_v45 = vadd.f32 %v3881_v34, %v648_v17  ;;  %v619_v46 = vmul.f32 %v3354_v22, %v3832_v12 }
 0x18b   : > { %v626_v10 = vmul.f32 %v3356_v43, %v3845_v40  ;;  %v664_v51 = vadd.f32 %v3881_v34, %v641_v47 }
 0x18c   : > { %v680_v29 = vpack.c.bf16 %v671_v45, %v670_v44  ;;  %v642_v50 = vmul.f32 %v3874_v11, %v619_v46 }
 0x18d   : > { %v3358_v33 = vpop.eup %3357  ;;  %v649_v54 = vmul.f32 %v3874_v11, %v626_v10 }
 0x18e   : > { %3097 = vmatprep.mubr.bf16.mxu1 %v680_v29  ;;  %v665_v52 = vadd.f32 %v3881_v34, %v642_v50  ;;  %v627_v53 = vmul.f32 %v3358_v33, %v3849_v14 }
 0x18f   : > { %v672_v56 = vadd.f32 %v3881_v34, %v649_v54 }
 0x190   : > { %v677_v55 = vpack.c.bf16 %v665_v52, %v664_v51  ;;  %v650_v12 = vmul.f32 %v3874_v11, %v627_v53 }
 0x192   : > { %3090 = vmatmul.mubr.bf16.gmra.mrb[4].mxu0 %v677_v55  ;;  %v673_v40 = vadd.f32 %v3881_v34, %v650_v12 }
 0x194   : > { %v681_v57 = vpack.c.bf16 %v673_v40, %v672_v56 }
 0x196   : > { %3098 = vmatmul.mubr.bf16.gmra.mrb[4].mxu1 %v681_v57 }
 0x255   : > { %v3087_v14 = vpop.f32.mrb[0].mxu0 }
 0x256   : > { %v780_v11 = vpop.f32.mrb[1].mxu0 }
 0x257   : > { %v3088_v34 = vpop.f32.mrb[2].mxu0 }
 0x258   : > { %v2773_v39 = vpack.c.bf16 %v3088_v34, %v3087_v14  ;;  %v783_v61 = vpop.f32.mrb[3].mxu0 }
 0x259   : > { %v2768_v62 = vpack.c.bf16 %v783_v61, %v780_v11  ;;  %v3095_v63 = vpop.f32.mrb[0].mxu1 }
 0x25a   : > { %2845 = vst [vmem:[%s3682_s20 + $0x8] sm:$0xff] %v2773_v39   ;;  %v812_v0 = vpop.f32.mrb[1].mxu1 }
 0x25b   : > { %2769 = vst [vmem:[%s3682_s20] sm:$0xff] %v2768_v62   ;;  %v3096_v1 = vpop.f32.mrb[2].mxu1 }
 0x25c   : > { %v2793_v48 = vpack.c.bf16 %v3096_v1, %v3095_v63  ;;  %v815_v2 = vpop.f32.mrb[3].mxu1 }
 0x25d   : > { %v2788_v3 = vpack.c.bf16 %v815_v2, %v812_v0 }
 0x25e   : > { %2849 = vst [vmem:[%s3682_s20 + $0x28] sm:$0xff] %v2793_v48  }
 0x25f   : > { %2848 = vst [vmem:[%s3682_s20 + $0x20] sm:$0xff] %v2788_v3  }
 0x265   : > { %v3091_v6 = vpop.f32.mrb[4].mxu0 }
 0x266   : > { %v796_v7 = vpop.f32.mrb[5].mxu0 }
 0x267   : > { %v3092_v8 = vpop.f32.mrb[6].mxu0 }
 0x268   : > { %v2783_v9 = vpack.c.bf16 %v3092_v8, %v3091_v6  ;;  %v799_v16 = vpop.f32.mrb[7].mxu0 }
 0x269   : > { %v2778_v18 = vpack.c.bf16 %v799_v16, %v796_v7  ;;  %v3099_v49 = vpop.f32.mrb[4].mxu1 }
 0x26a   : > { %2847 = vst [vmem:[%s3682_s20 + $0x18] sm:$0xff] %v2783_v9   ;;  %v828_v19 = vpop.f32.mrb[5].mxu1 }
 0x26b   : > { %2846 = vst [vmem:[%s3682_s20 + $0x10] sm:$0xff] %v2778_v18   ;;  %v3100_v20 = vpop.f32.mrb[6].mxu1 }
 0x26c   : > { %v2803_v58 = vpack.c.bf16 %v3100_v20, %v3099_v49  ;;  %v831_v21 = vpop.f32.mrb[7].mxu1 }
 0x26d   : > { %v2798_v23 = vpack.c.bf16 %v831_v21, %v828_v19 }
 0x26e   : > { %2851 = vst [vmem:[%s3682_s20 + $0x38] sm:$0xff] %v2803_v58  }
 0x26f   : > { %2850 = vst [vmem:[%s3682_s20 + $0x30] sm:$0xff] %v2798_v23  }
 0x270 PF: > { %s939_s12 = sld [smem:[#allocation5 + %s3495_s28]]  ;;  %s942_s17 = sadd.s32 128, %s3675_s22 }
 0x271   : > { %s941_s16 = sld [smem:[#allocation4 + %s3495_s28]] }
 0x276   : > { %p940_p12 = scmp.ge.s32.totalorder %s939_s12, %s3675_s22 }
 0x277   : > { %p943_p0 = scmp.lt.s32.totalorder %s941_s16, %s942_s17 }
 0x279   : > { %p944_p1 = pnand %p943_p0, %p940_p12 }
 0x27a   : > { %v1012_v24 = vld [vmem:[%s4781_s6] sm:$0xff] (!%p944_p1)  ;;  %v1013_v25 = vld [vmem:[%s4781_s6 + $0x8] sm:$0xff] (!%p944_p1)  ;;  %vm1021_vm1 = vcmask (!%p944_p1), 130048   ;;  %v950_v31 = vld [vmem:[%s3680_s19 + $0x10] sm:$0xff] (!%p944_p1) }
 0x27b   : > { %947 = sbr.rel (%p944_p1) target bundleno = 1266 (0x4f2), region = 60  ;;  %v948_v26 = vld [vmem:[%s3680_s19] sm:$0xff] (!%p944_p1)  ;;  %v3201_v27 = vpack.c.bf16 (!%p944_p1), %v1013_v25, %v1012_v24  ;;  %v949_v30 = vld [vmem:[%s3680_s19 + $0x8] sm:$0xff] (!%p944_p1)  ;;  %v951_v59 = vld [vmem:[%s3680_s19 + $0x18] sm:$0xff] (!%p944_p1) }
 0x27c   : > { %3105 = vmatprep.mubr.msk.f32.mxu0 (!%p944_p1), %vm1021_vm1, %v948_v26  ;;  %v952_v32 = vld [vmem:[%s3680_s19 + $0x20] sm:$0xff] (!%p944_p1)  ;;  %v953_v28 = vld [vmem:[%s3680_s19 + $0x28] sm:$0xff] (!%p944_p1)  ;;  %v954_v4 = vld [vmem:[%s3680_s19 + $0x30] sm:$0xff] (!%p944_p1) }
 0x27d   : > { %3202 = vmatprep.subr.bf16.mxu0 (!%p944_p1), %v3201_v27  ;;  %v955_v13 = vld [vmem:[%s3680_s19 + $0x38] sm:$0xff] (!%p944_p1)  ;;  %v956_v35 = vld [vmem:[%s3680_s19 + $0x40] sm:$0xff] (!%p944_p1)  ;;  %v957_v36 = vld [vmem:[%s3680_s19 + $0x48] sm:$0xff] (!%p944_p1) }
 0x27e   : > { %3204 = vmatpush3.bf16.msra.mxu0 (!%p944_p1), %v3201_v27  ;;  %v958_v37 = vld [vmem:[%s3680_s19 + $0x50] sm:$0xff] (!%p944_p1)  ;;  %v959_v15 = vld [vmem:[%s3680_s19 + $0x58] sm:$0xff] (!%p944_p1)  ;;  %v960_v41 = vld [vmem:[%s3680_s19 + $0x60] sm:$0xff] (!%p944_p1)  ;;  %v1696_v27 = vlaneseq (!%p944_p1) }
 0x27f   : > { %v961_v42 = vld [vmem:[%s3680_s19 + $0x68] sm:$0xff] (!%p944_p1)  ;;  %v962_v5 = vld [vmem:[%s3680_s19 + $0x70] sm:$0xff] (!%p944_p1)  ;;  %v963_v38 = vld [vmem:[%s3680_s19 + $0x78] sm:$0xff] (!%p944_p1) }
 0x280   : > { %v964_v17 = vld [vmem:[%s3680_s19 + $0x80] sm:$0xff] (!%p944_p1)  ;;  %v965_v22 = vld [vmem:[%s3680_s19 + $0x88] sm:$0xff] (!%p944_p1)  ;;  %v966_v43 = vld [vmem:[%s3680_s19 + $0x90] sm:$0xff] (!%p944_p1) }
 0x281   : > { %3106 = vmatmul.mubr.msk.f32.vlgmr.msra.gmra.mrb[0].mxu0 (!%p944_p1), %vm1021_vm1, %v949_v30  ;;  %v967_v44 = vld [vmem:[%s3680_s19 + $0x98] sm:$0xff] (!%p944_p1)  ;;  %v968_v45 = vld [vmem:[%s3680_s19 + $0xa0] sm:$0xff] (!%p944_p1)  ;;  %v969_v46 = vld [vmem:[%s3680_s19 + $0xa8] sm:$0xff] (!%p944_p1)  ;;  %v4074_v30 = vshrl.u32 (!%p944_p1), %v1696_v27, 7 }
 0x282   : > { %3108 = vmatprep.mubr.msk.f32.mxu0 %vm1021_vm1, %v950_v31  ;;  %v970_v47 = vld [vmem:[%s3680_s19 + $0xb0] sm:$0xff]  ;;  %v971_v10 = vld [vmem:[%s3680_s19 + $0xb8] sm:$0xff]  ;;  %v972_v29 = vld [vmem:[%s3680_s19 + $0xc0] sm:$0xff] }
 0x283   : > { %v973_v50 = vld [vmem:[%s3680_s19 + $0xc8] sm:$0xff]  ;;  %v974_v33 = vld [vmem:[%s3680_s19 + $0xd0] sm:$0xff]  ;;  %v975_v51 = vld [vmem:[%s3680_s19 + $0xd8] sm:$0xff]  ;;  %v1699_v31 = vadd.s32 16, %v4074_v30 }
 0x284   : > { %v976_v52 = vld [vmem:[%s3680_s19 + $0xe0] sm:$0xff]  ;;  %v977_v53 = vld [vmem:[%s3680_s19 + $0xe8] sm:$0xff]  ;;  %v978_v54 = vld [vmem:[%s3680_s19 + $0xf0] sm:$0xff] }
 0x285   : > { %3109 = vmatmul.mubr.msk.f32.gmra.mrb[2].mxu0 %vm1021_vm1, %v951_v59  ;;  %v979_v55 = vld [vmem:[%s3680_s19 + $0xf8] sm:$0xff]  ;;  %v980_v12 = vld [vmem:[%s3680_s19 + $0x100] sm:$0xff]  ;;  %v981_v56 = vld [vmem:[%s3680_s19 + $0x108] sm:$0xff]  ;;  %v1700_v59 = vadd.s32 24, %v4074_v30 }
 0x286   : > { %3111 = vmatprep.mubr.msk.f32.mxu0 %vm1021_vm1, %v952_v32  ;;  %v982_v40 = vld [vmem:[%s3680_s19 + $0x110] sm:$0xff]  ;;  %v983_v57 = vld [vmem:[%s3680_s19 + $0x118] sm:$0xff]  ;;  %v984_v60 = vld [vmem:[%s3680_s19 + $0x120] sm:$0xff]  ;;  %v1736_v32 = vsub.s32 1, %v4074_v30 }
 0x287   : > { %v985_v14 = vld [vmem:[%s3680_s19 + $0x128] sm:$0xff]  ;;  %v986_v11 = vld [vmem:[%s3680_s19 + $0x130] sm:$0xff]  ;;  %v987_v34 = vld [vmem:[%s3680_s19 + $0x138] sm:$0xff] }
 0x288   : > { %v988_v39 = vld [vmem:[%s3680_s19 + $0x140] sm:$0xff]  ;;  %v989_v61 = vld [vmem:[%s3680_s19 + $0x148] sm:$0xff]  ;;  %v990_v62 = vld [vmem:[%s3680_s19 + $0x150] sm:$0xff] }
 0x289   : > { %3112 = vmatmul.mubr.msk.f32.gmra.mrb[4].mxu0 %vm1021_vm1, %v953_v28  ;;  %v991_v63 = vld [vmem:[%s3680_s19 + $0x158] sm:$0xff]  ;;  %v992_v0 = vld [vmem:[%s3680_s19 + $0x160] sm:$0xff]  ;;  %v993_v1 = vld [vmem:[%s3680_s19 + $0x168] sm:$0xff] }
 0x28a   : > { %3114 = vmatprep.mubr.msk.f32.mxu0 %vm1021_vm1, %v954_v4  ;;  %v994_v48 = vld [vmem:[%s3680_s19 + $0x170] sm:$0xff]  ;;  %v995_v2 = vld [vmem:[%s3680_s19 + $0x178] sm:$0xff]  ;;  %v996_v3 = vld [vmem:[%s3680_s19 + $0x180] sm:$0xff]  ;;  %v4087_v4 = vstv %s3675_s22 }
 0x28b   : > { %v997_v6 = vld [vmem:[%s3680_s19 + $0x188] sm:$0xff]  ;;  %v998_v7 = vld [vmem:[%s3680_s19 + $0x190] sm:$0xff]  ;;  %v999_v8 = vld [vmem:[%s3680_s19 + $0x198] sm:$0xff] }
 0x28c   : > { %v1000_v9 = vld [vmem:[%s3680_s19 + $0x1a0] sm:$0xff]  ;;  %v1001_v16 = vld [vmem:[%s3680_s19 + $0x1a8] sm:$0xff]  ;;  %v1002_v18 = vld [vmem:[%s3680_s19 + $0x1b0] sm:$0xff] }
 0x28d   : > { %3115 = vmatmul.mubr.msk.f32.gmra.mrb[6].mxu0 %vm1021_vm1, %v955_v13  ;;  %v1003_v49 = vld [vmem:[%s3680_s19 + $0x1b8] sm:$0xff]  ;;  %v1004_v19 = vld [vmem:[%s3680_s19 + $0x1c0] sm:$0xff]  ;;  %v1005_v20 = vld [vmem:[%s3680_s19 + $0x1c8] sm:$0xff]  ;;  %v1732_v13 = vsub.s32 0, %v4074_v30 }
 0x28e   : > { %3117 = vmatprep.mubr.msk.f32.mxu0 %vm1021_vm1, %v956_v35  ;;  %v1006_v58 = vld [vmem:[%s3680_s19 + $0x1d0] sm:$0xff]  ;;  %v1007_v21 = vld [vmem:[%s3680_s19 + $0x1d8] sm:$0xff]  ;;  %v1008_v23 = vld [vmem:[%s3680_s19 + $0x1e0] sm:$0xff]  ;;  %v4091_v35 = vadd.s32 %v4087_v4, %v1699_v31 }
 0x28f   : > { %v1009_v24 = vld [vmem:[%s3680_s19 + $0x1e8] sm:$0xff]  ;;  %v1010_v25 = vld [vmem:[%s3680_s19 + $0x1f0] sm:$0xff]  ;;  %v1011_v26 = vld [vmem:[%s3680_s19 + $0x1f8] sm:$0xff] }
 0x290   : > { %v4084_v28 = vld [vmem:[%s401_s30] sm:$0xf] }
 0x291   : > { %3118 = vmatmul.mubr.msk.f32.gmra.mrb[8].mxu0 %vm1021_vm1, %v957_v36  ;;  %v4094_v36 = vadd.s32 %v4087_v4, %v1700_v59 }
 0x292   : > { %3120 = vmatprep.mubr.msk.f32.mxu0 %vm1021_vm1, %v958_v37  ;;  %v4097_v37 = vrot.slane %v4084_v28, %v1736_v32 }
 0x294   : > { %vm1755_vm2 = vcmp.eq.s32.totalorder %v4091_v35, %v4097_v37  ;;  %vm1759_vm3 = vcmp.eq.s32.totalorder %v4094_v36, %v4097_v37 }
 0x295   : > { %3121 = vmatmul.mubr.msk.f32.gmra.mrb[10].mxu0 %vm1021_vm1, %v959_v15  ;;  %v4100_v15 = vrot.slane %v4084_v28, %v1732_v13  ;;  %vm2646_vm4 = vmpackc.low %vm1759_vm3, %vm1755_vm2 }
 0x296   : > { %3123 = vmatprep.mubr.msk.f32.mxu0 %vm1021_vm1, %v960_v41  ;;  %v3516_v41 = vmov 1.0|1.0  }
 0x297   : > { %vm1754_vm5 = vcmp.eq.s32.totalorder %v4091_v35, %v4100_v15  ;;  %vm1758_vm6 = vcmp.eq.s32.totalorder %v4094_v36, %v4100_v15  ;;  %2647 = vmatprep.mubr.msk.bf16.mxu1 %vm2646_vm4, %v3516_v41 }
 0x298   : > { %vm4111_vm7 = vmpackc.low %vm1758_vm6, %vm1754_vm5 }
 0x299   : > { %3124 = vmatmul.mubr.msk.f32.gmra.mrb[12].mxu0 %vm1021_vm1, %v961_v42 }
 0x29a   : > { %3126 = vmatprep.mubr.msk.f32.mxu0 %vm1021_vm1, %v962_v5  ;;  %v1701_v5 = vadd.s32 32, %v4074_v30 }
 0x29d   : > { %3127 = vmatmul.mubr.msk.f32.gmra.mrb[14].mxu0 %vm1021_vm1, %v963_v38  ;;  %v1702_v38 = vadd.s32 40, %v4074_v30 }
 0x29e   : > { %3129 = vmatprep.mubr.msk.f32.mxu0 %vm1021_vm1, %v964_v17  ;;  %v4118_v17 = vadd.s32 %v4087_v4, %v1701_v5 }
 0x2a0   : > { %vm1763_vm8 = vcmp.eq.s32.totalorder %v4118_v17, %v4097_v37  ;;  %vm1762_vm11 = vcmp.eq.s32.totalorder %v4118_v17, %v4100_v15 }
 0x2a1   : > { %3130 = vmatmul.mubr.msk.f32.gmra.mrb[16].mxu0 %vm1021_vm1, %v965_v22  ;;  %v4121_v22 = vadd.s32 %v4087_v4, %v1702_v38 }
 0x2a2   : > { %3132 = vmatprep.mubr.msk.f32.mxu0 %vm1021_vm1, %v966_v43 }
 0x2a3   : > { %vm1767_vm9 = vcmp.eq.s32.totalorder %v4121_v22, %v4097_v37  ;;  %vm1766_vm12 = vcmp.eq.s32.totalorder %v4121_v22, %v4100_v15 }
 0x2a4   : > { %vm4127_vm10 = vmpackc.low %vm1767_vm9, %vm1763_vm8 }
 0x2a5   : > { %3133 = vmatmul.mubr.msk.f32.gmra.mrb[18].mxu0 %vm1021_vm1, %v967_v44  ;;  %vm4135_vm13 = vmpackc.low %vm1766_vm12, %vm1762_vm11 }
 0x2a6   : > { %3135 = vmatprep.mubr.msk.f32.mxu0 %vm1021_vm1, %v968_v45  ;;  %v1703_v45 = vadd.s32 48, %v4074_v30 }
 0x2a9   : > { %3136 = vmatmul.mubr.msk.f32.gmra.mrb[20].mxu0 %vm1021_vm1, %v969_v46  ;;  %v1704_v46 = vadd.s32 56, %v4074_v30 }
 0x2aa   : > { %3138 = vmatprep.mubr.msk.f32.mxu0 %vm1021_vm1, %v970_v47  ;;  %v4142_v47 = vadd.s32 %v4087_v4, %v1703_v45 }
 0x2ac   : > { %vm1771_vm14 = vcmp.eq.s32.totalorder %v4142_v47, %v4097_v37 }
 0x2ad   : > { %3139 = vmatmul.mubr.msk.f32.gmra.mrb[22].mxu0 %vm1021_vm1, %v971_v10  ;;  %v4145_v10 = vadd.s32 %v4087_v4, %v1704_v46 }
 0x2ae   : > { %3141 = vmatprep.mubr.msk.f32.mxu0 %vm1021_vm1, %v972_v29 }
 0x2af   : > { %vm1775_vm15 = vcmp.eq.s32.totalorder %v4145_v10, %v4097_v37  ;;  %vm1774_vm2 = vcmp.eq.s32.totalorder %v4145_v10, %v4100_v15 }
 0x2b0   : > { %vm4151_vm0 = vmpackc.low %vm1775_vm15, %vm1771_vm14 }
 0x2b1   : > { %3142 = vmatmul.mubr.msk.f32.gmra.mrb[24].mxu0 %vm1021_vm1, %v973_v50 }
 0x2b2   : > { %3144 = vmatprep.mubr.msk.f32.mxu0 %vm1021_vm1, %v974_v33  ;;  %v1705_v33 = vadd.s32 64, %v4074_v30 }
 0x2b5   : > { %3145 = vmatmul.mubr.msk.f32.gmra.mrb[26].mxu0 %vm1021_vm1, %v975_v51  ;;  %v1706_v51 = vadd.s32 72, %v4074_v30 }
 0x2b6   : > { %3147 = vmatprep.mubr.msk.f32.mxu0 %vm1021_vm1, %v976_v52  ;;  %v4166_v52 = vadd.s32 %v4087_v4, %v1705_v33 }
 0x2b8   : > { %vm1779_vm4 = vcmp.eq.s32.totalorder %v4166_v52, %v4097_v37  ;;  %vm1778_vm8 = vcmp.eq.s32.totalorder %v4166_v52, %v4100_v15 }
 0x2b9   : > { %3148 = vmatmul.mubr.msk.f32.gmra.mrb[28].mxu0 %vm1021_vm1, %v977_v53  ;;  %v4169_v53 = vadd.s32 %v4087_v4, %v1706_v51 }
 0x2ba   : > { %3150 = vmatprep.mubr.msk.f32.mxu0 %vm1021_vm1, %v978_v54 }
 0x2bb   : > { %vm1783_vm5 = vcmp.eq.s32.totalorder %v4169_v53, %v4097_v37  ;;  %vm1782_vm9 = vcmp.eq.s32.totalorder %v4169_v53, %v4100_v15 }
 0x2bc   : > { %vm4175_vm6 = vmpackc.low %vm1783_vm5, %vm1779_vm4 }
 0x2bd   : > { %3151 = vmatmul.mubr.msk.f32.gmra.mrb[30].mxu0 %vm1021_vm1, %v979_v55  ;;  %vm4183_vm11 = vmpackc.low %vm1782_vm9, %vm1778_vm8 }
 0x2be   : > { %3153 = vmatprep.mubr.msk.f32.mxu0 %vm1021_vm1, %v980_v12  ;;  %v1707_v12 = vadd.s32 80, %v4074_v30 }
 0x2c1   : > { %3154 = vmatmul.mubr.msk.f32.gmra.mrb[32].mxu0 %vm1021_vm1, %v981_v56  ;;  %v1708_v56 = vadd.s32 88, %v4074_v30 }
 0x2c2   : > { %3156 = vmatprep.mubr.msk.f32.mxu0 %vm1021_vm1, %v982_v40  ;;  %v4190_v40 = vadd.s32 %v4087_v4, %v1707_v12  ;;  %v4837_v12 = vmov 0 }
 0x2c4   : > { %vm1787_vm12 = vcmp.eq.s32.totalorder %v4190_v40, %v4097_v37 }
 0x2c5   : > { %3157 = vmatmul.mubr.msk.f32.gmra.mrb[34].mxu0 %vm1021_vm1, %v983_v57  ;;  %v4193_v57 = vadd.s32 %v4087_v4, %v1708_v56 }
 0x2c6   : > { %3159 = vmatprep.mubr.msk.f32.mxu0 %vm1021_vm1, %v984_v60  ;;  %v4818_v60 = vmov 0 }
 0x2c7   : > { %vm1791_vm14 = vcmp.eq.s32.totalorder %v4193_v57, %v4097_v37 }
 0x2c8   : > { %vm4199_vm15 = vmpackc.low %vm1791_vm14, %vm1787_vm12 }
 0x2c9   : > { %3160 = vmatmul.mubr.msk.f32.gmra.mrb[36].mxu0 %vm1021_vm1, %v985_v14  ;;  %v4819_v60 = vsel %vm4199_vm15, 4294967295, %v4818_v60  ;;  %v4820_v14 = vmov 0 }
 0x2ca   : > { %3162 = vmatprep.mubr.msk.f32.mxu0 %vm1021_vm1, %v986_v11  ;;  %v1709_v11 = vadd.s32 96, %v4074_v30 }
 0x2cd   : > { %3163 = vmatmul.mubr.msk.f32.gmra.mrb[38].mxu0 %vm1021_vm1, %v987_v34  ;;  %v1710_v34 = vadd.s32 104, %v4074_v30 }
 0x2ce   : > { %3165 = vmatprep.mubr.msk.f32.mxu0 %vm1021_vm1, %v988_v39  ;;  %v4214_v39 = vadd.s32 %v4087_v4, %v1709_v11 }
 0x2d0   : > { %vm1795_vm5 = vcmp.eq.s32.totalorder %v4214_v39, %v4097_v37  ;;  %vm1794_vm12 = vcmp.eq.s32.totalorder %v4214_v39, %v4100_v15 }
 0x2d1   : > { %3166 = vmatmul.mubr.msk.f32.gmra.mrb[40].mxu0 %vm1021_vm1, %v989_v61  ;;  %v4217_v61 = vadd.s32 %v4087_v4, %v1710_v34 }
 0x2d2   : > { %3168 = vmatprep.mubr.msk.f32.mxu0 %vm1021_vm1, %v990_v62  ;;  %v4822_v62 = vmov 0 }
 0x2d3   : > { %vm1799_vm8 = vcmp.eq.s32.totalorder %v4217_v61, %v4097_v37  ;;  %vm1798_vm14 = vcmp.eq.s32.totalorder %v4217_v61, %v4100_v15 }
 0x2d4   : > { %vm4223_vm9 = vmpackc.low %vm1799_vm8, %vm1795_vm5 }
 0x2d5   : > { %3169 = vmatmul.mubr.msk.f32.gmra.mrb[42].mxu0 %vm1021_vm1, %v991_v63  ;;  %v4823_v62 = vsel %vm4223_vm9, 4294967295, %v4822_v62  ;;  %v4824_v63 = vmov 0 }
 0x2d6   : > { %3171 = vmatprep.mubr.msk.f32.mxu0 %vm1021_vm1, %v992_v0  ;;  %v1711_v0 = vadd.s32 112, %v4074_v30 }
 0x2d9   : > { %3172 = vmatmul.mubr.msk.f32.gmra.mrb[44].mxu0 %vm1021_vm1, %v993_v1  ;;  %v1712_v1 = vadd.s32 120, %v4074_v30 }
 0x2da   : > { %3174 = vmatprep.mubr.msk.f32.mxu0 %vm1021_vm1, %v994_v48  ;;  %v4238_v48 = vadd.s32 %v4087_v4, %v1711_v0 }
 0x2dd   : > { %3175 = vmatmul.mubr.msk.f32.gmra.mrb[46].mxu0 %vm1021_vm1, %v995_v2  ;;  %v4241_v2 = vadd.s32 %v4087_v4, %v1712_v1 }
 0x2de   : > { %3177 = vmatprep.mubr.msk.f32.mxu0 %vm1021_vm1, %v996_v3  ;;  %v4826_v3 = vmov 0 }
 0x2df   : > { %vm1807_vm5 = vcmp.eq.s32.totalorder %v4241_v2, %v4097_v37 }
 0x2e1   : > { %3178 = vmatmul.mubr.msk.f32.gmra.mrb[48].mxu0 %vm1021_vm1, %v997_v6  ;;  %v4828_v6 = vmov 0 }
 0x2e2   : > { %3180 = vmatprep.mubr.msk.f32.mxu0 %vm1021_vm1, %v998_v7  ;;  %v4262_v7 = vld [vmem:[%s4782_s7] ss:$0 sm:$0xff] }
 0x2e5   : > { %3181 = vmatmul.mubr.msk.f32.gmra.mrb[50].mxu0 %vm1021_vm1, %v999_v8 }
 0x2e6   : > { %3183 = vmatprep.mubr.msk.f32.mxu0 %vm1021_vm1, %v1000_v9 }
 0x2e9   : > { %3184 = vmatmul.mubr.msk.f32.gmra.mrb[52].mxu0 %vm1021_vm1, %v1001_v16 }
 0x2ea   : > { %3186 = vmatprep.mubr.msk.f32.mxu0 %vm1021_vm1, %v1002_v18  ;;  %v1698_v18 = vadd.s32 8, %v4074_v30 }
 0x2ed   : > { %3187 = vmatmul.mubr.msk.f32.gmra.mrb[54].mxu0 %vm1021_vm1, %v1003_v49  ;;  %v1744_v49 = vsub.s32 3, %v4074_v30 }
 0x2ee   : > { %3189 = vmatprep.mubr.msk.f32.mxu0 %vm1021_vm1, %v1004_v19 }
 0x2f1   : > { %3190 = vmatmul.mubr.msk.f32.gmra.mrb[56].mxu0 %vm1021_vm1, %v1005_v20  ;;  %v1740_v20 = vsub.s32 2, %v4074_v30 }
 0x2f2   : > { %3192 = vmatprep.mubr.msk.f32.mxu0 %vm1021_vm1, %v1006_v58 }
 0x2f3   : > { %v4276_v27 = vrot.slane %v4084_v28, %v1740_v20 }
 0x2f5   : > { %3193 = vmatmul.mubr.msk.f32.gmra.mrb[58].mxu0 %vm1021_vm1, %v1007_v21  ;;  %v1714_v21 = vadd.s32 %v4087_v4, %v4074_v30  ;;  %vm1756_vm15 = vcmp.eq.s32.totalorder %v4091_v35, %v4276_v27 }
 0x2f6   : > { %3195 = vmatprep.mubr.msk.f32.mxu0 %vm1021_vm1, %v1008_v23  ;;  %v1715_v23 = vadd.s32 %v4087_v4, %v1698_v18  ;;  %v4830_v4 = vmov 0 }
 0x2f9   : > { %3196 = vmatmul.mubr.msk.f32.gmra.mrb[60].mxu0 %vm1021_vm1, %v1009_v24  ;;  %v4273_v24 = vrot.slane %v4084_v28, %v1744_v49 }
 0x2fa   : > { %3198 = vmatprep.mubr.msk.f32.mxu0 %vm1021_vm1, %v1010_v25 }
 0x2fd   : > { %3199 = vmatmul.mubr.msk.f32.gmra.mrb[62].mxu0 %vm1021_vm1, %v1011_v26  ;;  %vm1770_vm1 = vcmp.eq.s32.totalorder %v4142_v47, %v4100_v15 }
 0x2fe   : > { %vm4159_vm3 = vmpackc.low %vm1774_vm2, %vm1770_vm1  ;;  %vm1786_vm1 = vcmp.eq.s32.totalorder %v4190_v40, %v4100_v15  ;;  %vm1790_vm2 = vcmp.eq.s32.totalorder %v4193_v57, %v4100_v15 }
 0x2ff   : > { %vm4207_vm4 = vmpackc.low %vm1790_vm2, %vm1786_vm1  ;;  %vm1803_vm2 = vcmp.eq.s32.totalorder %v4238_v48, %v4097_v37 }
 0x300   : > { %v4821_v14 = vsel %vm4207_vm4, 4294967295, %v4820_v14  ;;  %vm4231_vm1 = vmpackc.low %vm1798_vm14, %vm1794_vm12  ;;  %vm1802_vm12 = vcmp.eq.s32.totalorder %v4238_v48, %v4100_v15  ;;  %vm1806_vm14 = vcmp.eq.s32.totalorder %v4241_v2, %v4100_v15  ;;  %vm1751_vm4 = vcmp.eq.s32.totalorder %v1715_v23, %v4097_v37 }
 0x301   : > { %v4825_v63 = vsel %vm4231_vm1, 4294967295, %v4824_v63  ;;  %vm4247_vm8 = vmpackc.low %vm1807_vm5, %vm1803_vm2  ;;  %vm1749_vm2 = vcmp.eq.s32.totalorder %v1714_v21, %v4273_v24  ;;  %vm1753_vm5 = vcmp.eq.s32.totalorder %v1715_v23, %v4273_v24 }
 0x302   : > { %v4827_v3 = vsel %vm4247_vm8, 4294967295, %v4826_v3  ;;  %vm4255_vm1 = vmpackc.low %vm1806_vm14, %vm1802_vm12  ;;  %vm1752_vm8 = vcmp.eq.s32.totalorder %v1715_v23, %v4276_v27  ;;  %vm1760_vm12 = vcmp.eq.s32.totalorder %v4094_v36, %v4276_v27 }
 0x303   : > { %v4829_v6 = vsel %vm4255_vm1, 4294967295, %v4828_v6  ;;  %vm4285_vm14 = vmpackc.low %vm1753_vm5, %vm1749_vm2  ;;  %vm1748_vm1 = vcmp.eq.s32.totalorder %v1714_v21, %v4276_v27  ;;  %vm1757_vm2 = vcmp.eq.s32.totalorder %v4091_v35, %v4273_v24  ;;  %vm1761_vm5 = vcmp.eq.s32.totalorder %v4094_v36, %v4273_v24 }
 0x304   : > { %v4831_v4 = vsel %vm4285_vm14, 4294967295, %v4830_v4  ;;  %vm4291_vm9 = vmpackc.low %vm1752_vm8, %vm1748_vm1  ;;  %vm4834_vm14 = vcmp.eq.s32.totalorder %v1714_v21, %v4097_v37 }
 0x305   : > { %vm2642_vm1 = vmpackc.low %vm1751_vm4, %vm4834_vm14  ;;  %vm4839_vm14 = vcmp.eq.s32.totalorder %v1714_v21, %v4100_v15  ;;  %v4845_v21 = vmov 0 }
 0x306   : > { %vm4305_vm8 = vmpackc.low %vm1761_vm5, %vm1757_vm2  ;;  %2643 = vmatprep.mubr.msk.bf16.mxu0 %vm2642_vm1, %v3516_v41  ;;  %vm4840_vm2 = vcmp.eq.s32.totalorder %v1715_v23, %v4100_v15 }
 0x307   : > { %vm4317_vm4 = vmpackc.low %vm1760_vm12, %vm1756_vm15  ;;  %vm1765_vm15 = vcmp.eq.s32.totalorder %v4118_v17, %v4273_v24  ;;  %vm1769_vm12 = vcmp.eq.s32.totalorder %v4121_v22, %v4273_v24 }
 0x308   : > { %v4838_v12 = vsel %vm4317_vm4, 4294967295, %v4837_v12  ;;  %vm4325_vm5 = vmpackc.low %vm4840_vm2, %vm4839_vm14  ;;  %vm1764_vm14 = vcmp.eq.s32.totalorder %v4118_v17, %v4276_v27  ;;  %vm1768_vm2 = vcmp.eq.s32.totalorder %v4121_v22, %v4276_v27 }
 0x309   : > { %vm4338_vm1 = vmpackc.low %vm1769_vm12, %vm1765_vm15  ;;  %vm1773_vm15 = vcmp.eq.s32.totalorder %v4142_v47, %v4273_v24  ;;  %vm1777_vm12 = vcmp.eq.s32.totalorder %v4145_v10, %v4273_v24 }
 0x30a   : > { %vm4349_vm4 = vmpackc.low %vm1768_vm2, %vm1764_vm14  ;;  %vm1772_vm2 = vcmp.eq.s32.totalorder %v4142_v47, %v4276_v27 }
 0x30b   : > { %v4846_v21 = vsel %vm4349_vm4, 4294967295, %v4845_v21  ;;  %vm4362_vm14 = vmpackc.low %vm1777_vm12, %vm1773_vm15  ;;  %vm1776_vm4 = vcmp.eq.s32.totalorder %v4145_v10, %v4276_v27  ;;  %vm1781_vm15 = vcmp.eq.s32.totalorder %v4166_v52, %v4273_v24 }
 0x354   : > { %v3107_v8 = vpop.f32.mrb[0].mxu0 }
 0x355   : > { %v1286_v9 = vadd.f32 %v3107_v8, %v4262_v7  ;;  %v1280_v16 = vpop.f32.mrb[1].mxu0 }
 0x356   : > { %v1281_v19 = vadd.f32 %v4262_v7, %v1280_v16 }
 0x357   : > { %v1600_v58 = vmax.f32 %v1286_v9, 0.0 }
 0x358   : > { %v1599_v25 = vmax.f32 %v1281_v19, 0.0  ;;  %v3110_v26 = vpop.f32.mrb[2].mxu0  ;;  %v4843_v19 = vmov 0 }
 0x359   : > { %v1296_v31 = vadd.f32 %v3110_v26, %v4262_v7  ;;  %v1290_v59 = vpop.f32.mrb[3].mxu0  ;;  %v4844_v19 = vsel %vm4338_vm1, 4294967295, %v4843_v19  ;;  %vm4373_vm1 = vmpackc.low %vm1776_vm4, %vm1772_vm2  ;;  %vm1785_vm4 = vcmp.eq.s32.totalorder %v4169_v53, %v4273_v24  ;;  %vm1780_vm2 = vcmp.eq.s32.totalorder %v4166_v52, %v4276_v27 }
 0x35a   : > { %v4282_v30 = vpack.c.bf16 %v1600_v58, %v1599_v25  ;;  %v1291_v32 = vadd.f32 %v4262_v7, %v1290_v59  ;;  %vm4386_vm12 = vmpackc.low %vm1785_vm4, %vm1781_vm15  ;;  %vm1793_vm15 = vcmp.eq.s32.totalorder %v4193_v57, %v4273_v24 }
 0x35b   : > { %v1602_v28 = vmax.f32 %v1296_v31, 0.0 }
 0x35c   : > { %v1601_v5 = vmax.f32 %v1291_v32, 0.0  ;;  %v3113_v38 = vpop.f32.mrb[4].mxu0 }
 0x35d   : > { %v1306_v45 = vadd.f32 %v3113_v38, %v4262_v7  ;;  %v1300_v46 = vpop.f32.mrb[5].mxu0 }
 0x35e   : > { %v4314_v51 = vpack.c.bf16 %v1602_v28, %v1601_v5  ;;  %v1301_v37 = vadd.f32 %v4262_v7, %v1300_v46  ;;  %v4847_v46 = vmov 0 }
 0x35f   : > { %v1604_v56 = vmax.f32 %v1306_v45, 0.0  ;;  %v4848_v46 = vsel %vm4362_vm14, 4294967295, %v4847_v46 }
 0x360   : > { %v1603_v36 = vmax.f32 %v1301_v37, 0.0  ;;  %v3116_v11 = vpop.f32.mrb[6].mxu0 }
 0x361   : > { %v1316_v34 = vadd.f32 %v3116_v11, %v4262_v7  ;;  %v1310_v0 = vpop.f32.mrb[7].mxu0 }
 0x362   : > { %v4330_v1 = vpack.c.bf16 %v1604_v56, %v1603_v36  ;;  %v1311_v8 = vadd.f32 %v4262_v7, %v1310_v0  ;;  %v4849_v36 = vmov 0 }
 0x363   : > { %v1606_v9 = vmax.f32 %v1316_v34, 0.0  ;;  %v4850_v36 = vsel %vm4373_vm1, 4294967295, %v4849_v36  ;;  %vm1784_vm1 = vcmp.eq.s32.totalorder %v4169_v53, %v4276_v27 }
 0x364   : > { %v1605_v16 = vmax.f32 %v1311_v8, 0.0  ;;  %v3119_v18 = vpop.f32.mrb[8].mxu0  ;;  %vm4397_vm14 = vmpackc.low %vm1784_vm1, %vm1780_vm2  ;;  %vm1789_vm1 = vcmp.eq.s32.totalorder %v4190_v40, %v4273_v24  ;;  %vm1788_vm2 = vcmp.eq.s32.totalorder %v4190_v40, %v4276_v27 }
 0x365   : > { %v1326_v15 = vadd.f32 %v3119_v18, %v4262_v7  ;;  %v1320_v49 = vpop.f32.mrb[9].mxu0  ;;  %vm4410_vm4 = vmpackc.low %vm1793_vm15, %vm1789_vm1  ;;  %vm1801_vm1 = vcmp.eq.s32.totalorder %v4217_v61, %v4273_v24 }
 0x366   : > { %v4346_v20 = vpack.c.bf16 %v1606_v9, %v1605_v16  ;;  %v1321_v58 = vadd.f32 %v4262_v7, %v1320_v49 }
 0x367   : > { %v1608_v23 = vmax.f32 %v1326_v15, 0.0 }
 0x368   : > { %v1607_v25 = vmax.f32 %v1321_v58, 0.0  ;;  %v3122_v26 = vpop.f32.mrb[10].mxu0 }
 0x369   : > { %v1336_v31 = vadd.f32 %v3122_v26, %v4262_v7  ;;  %v1330_v59 = vpop.f32.mrb[11].mxu0 }
 0x36a   : > { %v4354_v32 = vpack.c.bf16 %v1608_v23, %v1607_v25  ;;  %v1331_v17 = vadd.f32 %v4262_v7, %v1330_v59  ;;  %v4851_v23 = vmov 0 }
 0x36b   : > { %v1610_v28 = vmax.f32 %v1336_v31, 0.0  ;;  %v4852_v23 = vsel %vm4386_vm12, 4294967295, %v4851_v23  ;;  %v4853_v31 = vmov 0 }
 0x36c   : > { %v1609_v22 = vmax.f32 %v1331_v17, 0.0  ;;  %v3125_v5 = vpop.f32.mrb[12].mxu0  ;;  %v4854_v31 = vsel %vm4397_vm14, 4294967295, %v4853_v31  ;;  %vm1792_vm14 = vcmp.eq.s32.totalorder %v4193_v57, %v4276_v27 }
 0x36d   : > { %v1346_v38 = vadd.f32 %v3125_v5, %v4262_v7  ;;  %v1340_v45 = vpop.f32.mrb[13].mxu0  ;;  %vm4419_vm12 = vmpackc.low %vm1792_vm14, %vm1788_vm2  ;;  %vm1797_vm14 = vcmp.eq.s32.totalorder %v4214_v39, %v4273_v24  ;;  %vm1796_vm2 = vcmp.eq.s32.totalorder %v4214_v39, %v4276_v27 }
 0x36e   : > { %v4370_v37 = vpack.c.bf16 %v1610_v28, %v1609_v22  ;;  %v1341_v56 = vadd.f32 %v4262_v7, %v1340_v45  ;;  %vm4434_vm15 = vmpackc.low %vm1801_vm1, %vm1797_vm14  ;;  %vm1809_vm14 = vcmp.eq.s32.totalorder %v4241_v2, %v4273_v24 }
 0x36f   : > { %v1612_v11 = vmax.f32 %v1346_v38, 0.0 }
 0x370   : > { %v1611_v34 = vmax.f32 %v1341_v56, 0.0  ;;  %v3128_v0 = vpop.f32.mrb[14].mxu0 }
 0x371   : > { %v1356_v8 = vadd.f32 %v3128_v0, %v4262_v7  ;;  %v1350_v9 = vpop.f32.mrb[15].mxu0  ;;  %v4855_v0 = vmov 0 }
 0x372   : > { %v4378_v16 = vpack.c.bf16 %v1612_v11, %v1611_v34  ;;  %v1351_v47 = vadd.f32 %v4262_v7, %v1350_v9  ;;  %v4856_v0 = vsel %vm4410_vm4, 4294967295, %v4855_v0 }
 0x373   : > { %v1614_v18 = vmax.f32 %v1356_v8, 0.0 }
 0x374   : > { %v1613_v10 = vmax.f32 %v1351_v47, 0.0  ;;  %v3131_v15 = vpop.f32.mrb[16].mxu0  ;;  %v4857_v47 = vmov 0 }
 0x375   : > { %v1366_v49 = vadd.f32 %v3131_v15, %v4262_v7  ;;  %v1360_v58 = vpop.f32.mrb[17].mxu0  ;;  %v4858_v47 = vsel %vm4419_vm12, 4294967295, %v4857_v47  ;;  %vm1800_vm12 = vcmp.eq.s32.totalorder %v4217_v61, %v4276_v27 }
 0x376   : > { %v4394_v25 = vpack.c.bf16 %v1614_v18, %v1613_v10  ;;  %v1361_v26 = vadd.f32 %v4262_v7, %v1360_v58  ;;  %vm4443_vm4 = vmpackc.low %vm1800_vm12, %vm1796_vm2  ;;  %vm1805_vm12 = vcmp.eq.s32.totalorder %v4238_v48, %v4273_v24  ;;  %vm1804_vm2 = vcmp.eq.s32.totalorder %v4238_v48, %v4276_v27 }
 0x377   : > { %v1616_v59 = vmax.f32 %v1366_v49, 0.0  ;;  %vm4458_vm1 = vmpackc.low %vm1809_vm14, %vm1805_vm12  ;;  %vm4876_vm12 = vnez %v4846_v21  ;;  %vm4877_vm14 = vnez %v4848_v46 }
 0x378   : > { %v1615_v17 = vmax.f32 %v1361_v26, 0.0  ;;  %v3134_v28 = vpop.f32.mrb[18].mxu0 }
 0x379   : > { %v1376_v22 = vadd.f32 %v3134_v28, %v4262_v7  ;;  %v1370_v5 = vpop.f32.mrb[19].mxu0 }
 0x37a   : > { %v1671_v38 = vpack.c.bf16 %v1616_v59, %v1615_v17  ;;  %v1371_v52 = vadd.f32 %v4262_v7, %v1370_v5 }
 0x37b   : > { %v1618_v45 = vmax.f32 %v1376_v22, 0.0 }
 0x37c   : > { %v1617_v56 = vmax.f32 %v1371_v52, 0.0  ;;  %v3137_v53 = vpop.f32.mrb[20].mxu0  ;;  %2941 = vmatprep.subr.bf16.mxu0 %v1671_v38  ;;  %3221 = vmatprep.subr.bf16.mxu1 %v1671_v38  ;;  %v4861_v38 = vmov 0 }
 0x37d   : > { %v1386_v11 = vadd.f32 %v3137_v53, %v4262_v7  ;;  %v1380_v34 = vpop.f32.mrb[21].mxu0  ;;  %2942 = vmatpush3.bf16.msra.mxu0 %v4282_v30  ;;  %3229 = vmatpush3.bf16.msra.mxu1 %v4282_v30  ;;  %v4862_v38 = vsel %vm4443_vm4, 4294967295, %v4861_v38  ;;  %vm1808_vm4 = vcmp.eq.s32.totalorder %v4241_v2, %v4276_v27 }
 0x37e   : > { %v1672_v8 = vpack.c.bf16 %v1618_v45, %v1617_v56  ;;  %v1381_v9 = vadd.f32 %v4262_v7, %v1380_v34 }
 0x37f   : > { %v1620_v18 = vmax.f32 %v1386_v11, 0.0 }
 0x380   : > { %v1619_v10 = vmax.f32 %v1381_v9, 0.0  ;;  %v3140_v30 = vpop.f32.mrb[22].mxu0  ;;  %2943 = vmatprep.subr.bf16.mxu0 %v1672_v8  ;;  %3222 = vmatprep.subr.bf16.mxu1 %v1672_v8 }
 0x381   : > { %v1396_v15 = vadd.f32 %v3140_v30, %v4262_v7  ;;  %v1390_v49 = vpop.f32.mrb[23].mxu0  ;;  %2944 = vmatpush3.bf16.msra.mxu0 %v4314_v51  ;;  %3230 = vmatpush3.bf16.msra.mxu1 %v4314_v51  ;;  %v4859_v51 = vmov 0 }
 0x382   : > { %v1673_v40 = vpack.c.bf16 %v1620_v18, %v1619_v10  ;;  %v1391_v57 = vadd.f32 %v4262_v7, %v1390_v49  ;;  %v4860_v51 = vsel %vm4434_vm15, 4294967295, %v4859_v51  ;;  %vm4467_vm15 = vmpackc.low %vm1808_vm4, %vm1804_vm2  ;;  %vm4875_vm4 = vnez %v4844_v19 }
 0x383   : > { %v1622_v58 = vmax.f32 %v1396_v15, 0.0  ;;  %vm4880_vm2 = vnez %v4854_v31 }
 0x384   : > { %v1621_v26 = vmax.f32 %v1391_v57, 0.0  ;;  %v3143_v59 = vpop.f32.mrb[24].mxu0  ;;  %2945 = vmatprep.subr.bf16.mxu0 %v1673_v40  ;;  %3223 = vmatprep.subr.bf16.mxu1 %v1673_v40 }
 0x385   : > { %v1406_v17 = vadd.f32 %v3143_v59, %v4262_v7  ;;  %v1400_v28 = vpop.f32.mrb[25].mxu0  ;;  %2946 = vmatpush3.bf16.msra.mxu0 %v4330_v1  ;;  %3231 = vmatpush3.bf16.msra.mxu1 %v4330_v1 }
 0x386   : > { %v1674_v22 = vpack.c.bf16 %v1622_v58, %v1621_v26  ;;  %v1401_v5 = vadd.f32 %v4262_v7, %v1400_v28 }
 0x387   : > { %v1624_v52 = vmax.f32 %v1406_v17, 0.0 }
 0x388   : > { %v1623_v45 = vmax.f32 %v1401_v5, 0.0  ;;  %v3146_v1 = vpop.f32.mrb[26].mxu0  ;;  %2947 = vmatprep.subr.bf16.mxu0 %v1674_v22  ;;  %3224 = vmatprep.subr.bf16.mxu1 %v1674_v22 }
 0x389   : > { %v1416_v56 = vadd.f32 %v3146_v1, %v4262_v7  ;;  %v1410_v53 = vpop.f32.mrb[27].mxu0  ;;  %2948 = vmatpush3.bf16.msra.mxu0 %v4346_v20  ;;  %3232 = vmatpush3.bf16.msra.mxu1 %v4346_v20 }
 0x38a   : > { %v1675_v39 = vpack.c.bf16 %v1624_v52, %v1623_v45  ;;  %v1411_v61 = vadd.f32 %v4262_v7, %v1410_v53 }
 0x38b   : > { %v1626_v11 = vmax.f32 %v1416_v56, 0.0 }
 0x38c   : > { %v1625_v34 = vmax.f32 %v1411_v61, 0.0  ;;  %v3149_v8 = vpop.f32.mrb[28].mxu0  ;;  %2949 = vmatprep.subr.bf16.mxu0 %v1675_v39  ;;  %3225 = vmatprep.subr.bf16.mxu1 %v1675_v39 }
 0x38d   : > { %v1426_v9 = vadd.f32 %v3149_v8, %v4262_v7  ;;  %v1420_v18 = vpop.f32.mrb[29].mxu0  ;;  %2950 = vmatpush3.bf16.msra.mxu0 %v4354_v32  ;;  %3233 = vmatpush3.bf16.msra.mxu1 %v4354_v32 }
 0x38e   : > { %v1676_v10 = vpack.c.bf16 %v1626_v11, %v1625_v34  ;;  %v1421_v24 = vadd.f32 %v4262_v7, %v1420_v18 }
 0x38f   : > { %v1628_v15 = vmax.f32 %v1426_v9, 0.0 }
 0x390   : > { %v1627_v49 = vmax.f32 %v1421_v24, 0.0  ;;  %v3152_v32 = vpop.f32.mrb[30].mxu0  ;;  %2951 = vmatprep.subr.bf16.mxu0 %v1676_v10  ;;  %3226 = vmatprep.subr.bf16.mxu1 %v1676_v10 }
 0x391   : > { %v1436_v40 = vadd.f32 %v3152_v32, %v4262_v7  ;;  %v1430_v57 = vpop.f32.mrb[31].mxu0  ;;  %2952 = vmatpush3.bf16.msra.mxu0 %v4370_v37  ;;  %3234 = vmatpush3.bf16.msra.mxu1 %v4370_v37 }
 0x392   : > { %v1677_v48 = vpack.c.bf16 %v1628_v15, %v1627_v49  ;;  %v1431_v2 = vadd.f32 %v4262_v7, %v1430_v57 }
 0x393   : > { %v1630_v27 = vmax.f32 %v1436_v40, 0.0 }
 0x394   : > { %v1629_v58 = vmax.f32 %v1431_v2, 0.0  ;;  %v3155_v26 = vpop.f32.mrb[32].mxu0  ;;  %2953 = vmatprep.subr.bf16.mxu0 %v1677_v48  ;;  %3227 = vmatprep.subr.bf16.mxu1 %v1677_v48 }
 0x395   : > { %v1446_v59 = vadd.f32 %v3155_v26, %v4262_v7  ;;  %v1440_v17 = vpop.f32.mrb[33].mxu0  ;;  %2954 = vmatpush3.bf16.msra.mxu0 %v4378_v16  ;;  %3235 = vmatpush3.bf16.msra.mxu1 %v4378_v16 }
 0x396   : > { %v1678_v28 = vpack.c.bf16 %v1630_v27, %v1629_v58  ;;  %v1441_v22 = vadd.f32 %v4262_v7, %v1440_v17 }
 0x397   : > { %v1632_v5 = vmax.f32 %v1446_v59, 0.0 }
 0x398   : > { %v1631_v37 = vmax.f32 %v1441_v22, 0.0  ;;  %v3158_v52 = vpop.f32.mrb[34].mxu0  ;;  %2955 = vmatprep.subr.bf16.mxu0 %v1678_v28  ;;  %3228 = vmatprep.subr.bf16.mxu1 %v1678_v28 }
 0x399   : > { %v1456_v45 = vadd.f32 %v3158_v52, %v4262_v7  ;;  %v1450_v1 = vpop.f32.mrb[35].mxu0  ;;  %2956 = vmatpush3.bf16.msra.mxu0 %v4394_v25  ;;  %3236 = vmatpush3.bf16.msra.mxu1 %v4394_v25 }
 0x39a   : > { %v4482_v56 = vpack.c.bf16 %v1632_v5, %v1631_v37  ;;  %v1451_v53 = vadd.f32 %v4262_v7, %v1450_v1 }
 0x39b   : > { %v1634_v16 = vmax.f32 %v1456_v45, 0.0 }
 0x39c   : > { %v1633_v39 = vmax.f32 %v1451_v53, 0.0  ;;  %v3161_v61 = vpop.f32.mrb[36].mxu0  ;;  %2649 = vmatmul.mubr.msk.bf16.vlgmr.msra.gmra.mrb[0].mxu1 %vm4111_vm7, %v3516_v41  ;;  %2645 = vmatmul.mubr.msk.bf16.vlgmr.msra.gmra.mrb[64].mxu0 %vm4325_vm5, %v3516_v41  ;;  %vm4867_vm7 = vnez %v4819_v60  ;;  %vm4874_vm5 = vnez %v4838_v12 }
 0x39d   : > { %v1466_v11 = vadd.f32 %v3161_v61, %v4262_v7  ;;  %v1460_v34 = vpop.f32.mrb[37].mxu0  ;;  %2651 = vmatprep.mubr.msk.bf16.mxu1 %vm4127_vm10, %v3516_v41  ;;  %vm4868_vm10 = vnez %v4821_v14 }
 0x39e   : > { %v4495_v25 = vpack.c.bf16 %v1634_v16, %v1633_v39  ;;  %v1461_v8 = vadd.f32 %v4262_v7, %v1460_v34 }
 0x39f   : > { %v1636_v9 = vmax.f32 %v1466_v11, 0.0 }
 0x3a0   : > { %v1635_v18 = vmax.f32 %v1461_v8, 0.0  ;;  %v3164_v10 = vpop.f32.mrb[38].mxu0 }
 0x3a1   : > { %v1476_v42 = vadd.f32 %v3164_v10, %v4262_v7  ;;  %v1470_v24 = vpop.f32.mrb[39].mxu0 }
 0x3a2   : > { %v4499_v15 = vpack.c.bf16 %v1636_v9, %v1635_v18  ;;  %v1471_v35 = vadd.f32 %v4262_v7, %v1470_v24 }
 0x3a3   : > { %v1638_v49 = vmax.f32 %v1476_v42, 0.0 }
 0x3a4   : > { %v1637_v32 = vmax.f32 %v1471_v35, 0.0  ;;  %v3167_v40 = vpop.f32.mrb[40].mxu0  ;;  %2653 = vmatmul.mubr.msk.bf16.gmra.mrb[4].mxu1 %vm4135_vm13, %v3516_v41  ;;  %vm4869_vm13 = vnez %v4823_v62 }
 0x3a5   : > { %v1486_v43 = vadd.f32 %v3167_v40, %v4262_v7  ;;  %v1480_v57 = vpop.f32.mrb[41].mxu0  ;;  %2655 = vmatprep.mubr.msk.bf16.mxu1 %vm4151_vm0, %v3516_v41  ;;  %vm4870_vm0 = vnez %v4825_v63 }
 0x3a6   : > { %v4509_v48 = vpack.c.bf16 %v1638_v49, %v1637_v32  ;;  %v1481_v2 = vadd.f32 %v4262_v7, %v1480_v57 }
 0x3a7   : > { %v1640_v27 = vmax.f32 %v1486_v43, 0.0 }
 0x3a8   : > { %v1639_v58 = vmax.f32 %v1481_v2, 0.0  ;;  %v3170_v26 = vpop.f32.mrb[42].mxu0 }
 0x3a9   : > { %v1496_v59 = vadd.f32 %v3170_v26, %v4262_v7  ;;  %v1490_v17 = vpop.f32.mrb[43].mxu0 }
 0x3aa   : > { %v4513_v28 = vpack.c.bf16 %v1640_v27, %v1639_v58  ;;  %v1491_v44 = vadd.f32 %v4262_v7, %v1490_v17 }
 0x3ab   : > { %v1642_v22 = vmax.f32 %v1496_v59, 0.0 }
 0x3ac   : > { %v1641_v5 = vmax.f32 %v1491_v44, 0.0  ;;  %v3173_v37 = vpop.f32.mrb[44].mxu0  ;;  %2657 = vmatmul.mubr.msk.bf16.gmra.mrb[8].mxu1 %vm4159_vm3, %v3516_v41  ;;  %vm4871_vm3 = vnez %v4827_v3 }
 0x3ad   : > { %v1506_v29 = vadd.f32 %v3173_v37, %v4262_v7  ;;  %v1500_v52 = vpop.f32.mrb[45].mxu0  ;;  %2659 = vmatprep.mubr.msk.bf16.mxu1 %vm4175_vm6, %v3516_v41  ;;  %vm4872_vm6 = vnez %v4829_v6 }
 0x3ae   : > { %v4523_v45 = vpack.c.bf16 %v1642_v22, %v1641_v5  ;;  %v1501_v1 = vadd.f32 %v4262_v7, %v1500_v52 }
 0x3af   : > { %v1644_v53 = vmax.f32 %v1506_v29, 0.0 }
 0x3b0   : > { %v1643_v16 = vmax.f32 %v1501_v1, 0.0  ;;  %v3176_v39 = vpop.f32.mrb[46].mxu0 }
 0x3b1   : > { %v1516_v61 = vadd.f32 %v3176_v39, %v4262_v7  ;;  %v1510_v11 = vpop.f32.mrb[47].mxu0 }
 0x3b2   : > { %v4527_v34 = vpack.c.bf16 %v1644_v53, %v1643_v16  ;;  %v1511_v50 = vadd.f32 %v4262_v7, %v1510_v11 }
 0x3b3   : > { %v1646_v8 = vmax.f32 %v1516_v61, 0.0 }
 0x3b4   : > { %v1645_v9 = vmax.f32 %v1511_v50, 0.0  ;;  %v3179_v18 = vpop.f32.mrb[48].mxu0  ;;  %2661 = vmatmul.mubr.msk.bf16.gmra.mrb[12].mxu1 %vm4183_vm11, %v3516_v41  ;;  %vm4873_vm11 = vnez %v4831_v4 }
 0x3b5   : > { %v1526_v54 = vadd.f32 %v3179_v18, %v4262_v7  ;;  %v1520_v10 = vpop.f32.mrb[49].mxu0  ;;  %2663 = vmatprep.mubr.msk.bf16.mxu1 %vm4867_vm7, %v3516_v41  ;;  %vm4881_vm7 = vnez %v4856_v0 }
 0x3b6   : > { %v4537_v42 = vpack.c.bf16 %v1646_v8, %v1645_v9  ;;  %v1521_v24 = vadd.f32 %v4262_v7, %v1520_v10 }
 0x3b7   : > { %v1648_v35 = vmax.f32 %v1526_v54, 0.0 }
 0x3b8   : > { %v1647_v49 = vmax.f32 %v1521_v24, 0.0  ;;  %v3182_v32 = vpop.f32.mrb[50].mxu0 }
 0x3b9   : > { %v1536_v40 = vadd.f32 %v3182_v32, %v4262_v7  ;;  %v1530_v43 = vpop.f32.mrb[51].mxu0 }
 0x3ba   : > { %v1687_v57 = vpack.c.bf16 %v1648_v35, %v1647_v49  ;;  %v1531_v55 = vadd.f32 %v4262_v7, %v1530_v43 }
 0x3bb   : > { %v1650_v2 = vmax.f32 %v1536_v40, 0.0 }
 0x3bc   : > { %v1649_v27 = vmax.f32 %v1531_v55, 0.0  ;;  %v3185_v58 = vpop.f32.mrb[52].mxu0  ;;  %3005 = vmatprep.subr.bf16.mxu1 %v1687_v57  ;;  %2665 = vmatmul.mubr.msk.bf16.gmra.mrb[16].mxu1 %vm4868_vm10, %v3516_v41  ;;  %vm4882_vm10 = vnez %v4858_v47 }
 0x3bd   : > { %v1546_v60 = vadd.f32 %v3185_v58, %v4262_v7  ;;  %v1540_v26 = vpop.f32.mrb[53].mxu0  ;;  %3006 = vmatpush3.bf16.msra.mxu1 %v4482_v56  ;;  %2667 = vmatprep.mubr.msk.bf16.mxu1 %vm4869_vm13, %v3516_v41  ;;  %vm4883_vm13 = vnez %v4860_v51 }
 0x3be   : > { %v1688_v59 = vpack.c.bf16 %v1650_v2, %v1649_v27  ;;  %v1541_v17 = vadd.f32 %v4262_v7, %v1540_v26 }
 0x3bf   : > { %v1652_v44 = vmax.f32 %v1546_v60, 0.0 }
 0x3c0   : > { %v1651_v22 = vmax.f32 %v1541_v17, 0.0  ;;  %v3188_v5 = vpop.f32.mrb[54].mxu0  ;;  %3007 = vmatprep.subr.bf16.mxu1 %v1688_v59 }
 0x3c1   : > { %v1556_v37 = vadd.f32 %v3188_v5, %v4262_v7  ;;  %v1550_v14 = vpop.f32.mrb[55].mxu0  ;;  %3008 = vmatpush3.bf16.msra.mxu1 %v4495_v25 }
 0x3c2   : > { %v1689_v29 = vpack.c.bf16 %v1652_v44, %v1651_v22  ;;  %v1551_v52 = vadd.f32 %v4262_v7, %v1550_v14 }
 0x3c3   : > { %v1654_v56 = vmax.f32 %v1556_v37, 0.0 }
 0x3c4   : > { %v1653_v1 = vmax.f32 %v1551_v52, 0.0  ;;  %v3191_v53 = vpop.f32.mrb[56].mxu0  ;;  %3009 = vmatprep.subr.bf16.mxu1 %v1689_v29  ;;  %2669 = vmatmul.mubr.msk.bf16.gmra.mrb[20].mxu1 %vm4870_vm0, %v3516_v41  ;;  %vm4884_vm0 = vnez %v4862_v38 }
 0x3c5   : > { %v1566_v62 = vadd.f32 %v3191_v53, %v4262_v7  ;;  %v1560_v16 = vpop.f32.mrb[57].mxu0  ;;  %3010 = vmatpush3.bf16.msra.mxu1 %v4499_v15  ;;  %2671 = vmatprep.mubr.msk.bf16.mxu1 %vm4871_vm3, %v3516_v41 }
 0x3c6   : > { %v1690_v25 = vpack.c.bf16 %v1654_v56, %v1653_v1  ;;  %v1561_v39 = vadd.f32 %v4262_v7, %v1560_v16 }
 0x3c7   : > { %v1656_v61 = vmax.f32 %v1566_v62, 0.0 }
 0x3c8   : > { %v1655_v11 = vmax.f32 %v1561_v39, 0.0  ;;  %v3194_v50 = vpop.f32.mrb[58].mxu0  ;;  %3011 = vmatprep.subr.bf16.mxu1 %v1690_v25 }
 0x3c9   : > { %v1576_v8 = vadd.f32 %v3194_v50, %v4262_v7  ;;  %v1570_v63 = vpop.f32.mrb[59].mxu0  ;;  %3012 = vmatpush3.bf16.msra.mxu1 %v4509_v48 }
 0x3ca   : > { %v1691_v9 = vpack.c.bf16 %v1656_v61, %v1655_v11  ;;  %v1571_v18 = vadd.f32 %v4262_v7, %v1570_v63 }
 0x3cb   : > { %v1658_v15 = vmax.f32 %v1576_v8, 0.0 }
 0x3cc   : > { %v1657_v54 = vmax.f32 %v1571_v18, 0.0  ;;  %v3197_v10 = vpop.f32.mrb[60].mxu0  ;;  %3013 = vmatprep.subr.bf16.mxu1 %v1691_v9  ;;  %2673 = vmatmul.mubr.msk.bf16.gmra.mrb[24].mxu1 %vm4872_vm6, %v3516_v41 }
 0x3cd   : > { %v1586_v3 = vadd.f32 %v3197_v10, %v4262_v7  ;;  %v1580_v24 = vpop.f32.mrb[61].mxu0  ;;  %3014 = vmatpush3.bf16.msra.mxu1 %v4513_v28  ;;  %2675 = vmatprep.mubr.msk.bf16.mxu1 %vm4873_vm11, %v3516_v41 }
 0x3ce   : > { %v1692_v48 = vpack.c.bf16 %v1658_v15, %v1657_v54  ;;  %v1581_v35 = vadd.f32 %v4262_v7, %v1580_v24 }
 0x3cf   : > { %v1660_v49 = vmax.f32 %v1586_v3, 0.0 }
 0x3d0   : > { %v1659_v32 = vmax.f32 %v1581_v35, 0.0  ;;  %v3200_v40 = vpop.f32.mrb[62].mxu0  ;;  %3015 = vmatprep.subr.bf16.mxu1 %v1692_v48  ;;  %v1970_v35 = vld [vmem:[#allocation2] sm:$0xff] }
 0x3d1   : > { %v1596_v43 = vadd.f32 %v3200_v40, %v4262_v7  ;;  %v1590_v6 = vpop.f32.mrb[63].mxu0  ;;  %3016 = vmatpush3.bf16.msra.mxu1 %v4523_v45  ;;  %v1971_v40 = vld [vmem:[#allocation2 + $0x8] sm:$0xff] }
 0x3d2   : > { %v1693_v57 = vpack.c.bf16 %v1660_v49, %v1659_v32  ;;  %v1591_v55 = vadd.f32 %v4262_v7, %v1590_v6 }
 0x3d3   : > { %v1662_v28 = vmax.f32 %v1596_v43, 0.0 }
 0x3d4   : > { %v1661_v2 = vmax.f32 %v1591_v55, 0.0  ;;  %3017 = vmatprep.subr.bf16.mxu1 %v1693_v57 }
 0x3d5   : > { %3018 = vmatpush3.bf16.msra.mxu1 %v4527_v34 }
 0x3d6   : > { %v1694_v4 = vpack.c.bf16 %v1662_v28, %v1661_v2 }
 0x3d8   : > { %3019 = vmatprep.subr.bf16.mxu1 %v1694_v4 }
 0x3d9   : > { %3020 = vmatpush3.bf16.msra.mxu1 %v4537_v42 }
 0x3dc   : > { %2677 = vmatmul.mubr.msk.bf16.vlgmr.msra.gmra.mrb[28].mxu1 %vm4291_vm9, %v3516_v41  ;;  %vm4878_vm9 = vnez %v4850_v36 }
 0x3dd   : > { %2679 = vmatprep.mubr.msk.bf16.mxu1 %vm4305_vm8, %v3516_v41  ;;  %vm4879_vm8 = vnez %v4852_v23 }
 0x3e4   : > { %2681 = vmatmul.mubr.msk.bf16.gmra.mrb[32].mxu1 %vm4874_vm5, %v3516_v41 }
 0x3e5   : > { %2683 = vmatprep.mubr.msk.bf16.mxu1 %vm4875_vm4, %v3516_v41 }
 0x3ec   : > { %2685 = vmatmul.mubr.msk.bf16.gmra.mrb[36].mxu1 %vm4876_vm12, %v3516_v41 }
 0x3ed   : > { %2687 = vmatprep.mubr.msk.bf16.mxu1 %vm4877_vm14, %v3516_v41 }
 0x3f4   : > { %2689 = vmatmul.mubr.msk.bf16.gmra.mrb[40].mxu1 %vm4878_vm9, %v3516_v41 }
 0x3f5   : > { %2691 = vmatprep.mubr.msk.bf16.mxu1 %vm4879_vm8, %v3516_v41 }
 0x3fc   : > { %2693 = vmatmul.mubr.msk.bf16.gmra.mrb[44].mxu1 %vm4880_vm2, %v3516_v41 }
 0x3fd   : > { %2695 = vmatprep.mubr.msk.bf16.mxu1 %vm4881_vm7, %v3516_v41 }
 0x404   : > { %2697 = vmatmul.mubr.msk.bf16.gmra.mrb[48].mxu1 %vm4882_vm10, %v3516_v41 }
 0x405   : > { %2699 = vmatprep.mubr.msk.bf16.mxu1 %vm4883_vm13, %v3516_v41 }
 0x40c   : > { %2701 = vmatmul.mubr.msk.bf16.gmra.mrb[52].mxu1 %vm4884_vm0, %v3516_v41 }
 0x40d   : > { %2703 = vmatprep.mubr.msk.bf16.mxu1 %vm4458_vm1, %v3516_v41 }
 0x414   : > { %2705 = vmatmul.mubr.msk.bf16.gmra.mrb[56].mxu1 %vm4467_vm15, %v3516_v41 }
 0x46f   : > { %v2963_v7 = vpop.f32.mrb[0].mxu1  ;;  %v2957_v13 = vpop.f32.mrb[64].mxu0 }
 0x470   : > { %v2964_v33 = vpop.f32.mrb[1].mxu1  ;;  %v2958_v12 = vpop.f32.mrb[65].mxu0 }
 0x471   : > { %v4625_v19 = vadd.f32 %v2964_v33, %v2963_v7  ;;  %v2966_v21 = vpop.f32.mrb[2].mxu1  ;;  %v2959_v46 = vadd.f32 %v2958_v12, %v2957_v13  ;;  %v2960_v36 = vpop.f32.mrb[66].mxu0  ;;  %v1972_v7 = vld [vmem:[#allocation2 + $0x10] sm:$0xff] }
 0x472   : > { %v2967_v23 = vpop.f32.mrb[3].mxu1  ;;  %v2961_v31 = vpop.f32.mrb[67].mxu0 }
 0x473   : > { %v2968_v0 = vadd.f32 %v2967_v23, %v2966_v21  ;;  %v2962_v47 = vadd.f32 %v2961_v31, %v2960_v36  ;;  %v1973_v21 = vld [vmem:[#allocation2 + $0x18] sm:$0xff] }
 0x477   : > { %v2969_v51 = vpop.f32.mrb[4].mxu1 }
 0x478   : > { %v2970_v38 = vpop.f32.mrb[5].mxu1 }
 0x479   : > { %v4627_v20 = vadd.f32 %v2970_v38, %v2969_v51  ;;  %v2972_v45 = vpop.f32.mrb[6].mxu1 }
 0x47a   : > { %v2973_v30 = vpop.f32.mrb[7].mxu1 }
 0x47b   : > { %v4629_v41 = vadd.f32 %v2973_v30, %v2972_v45  ;;  %v1974_v45 = vld [vmem:[#allocation2 + $0x20] sm:$0xff] }
 0x47f   : > { %v2975_v34 = vpop.f32.mrb[8].mxu1 }
 0x480   : > { %v2976_v42 = vpop.f32.mrb[9].mxu1 }
 0x481   : > { %v4631_v27 = vadd.f32 %v2976_v42, %v2975_v34  ;;  %v2978_v58 = vpop.f32.mrb[10].mxu1 }
 0x482   : > { %v2979_v60 = vpop.f32.mrb[11].mxu1 }
 0x483   : > { %v4633_v26 = vadd.f32 %v2979_v60, %v2978_v58  ;;  %v1975_v58 = vld [vmem:[#allocation2 + $0x28] sm:$0xff] }
 0x487   : > { %v2981_v59 = vpop.f32.mrb[12].mxu1 }
 0x488   : > { %v2982_v17 = vpop.f32.mrb[13].mxu1 }
 0x489   : > { %v4635_v44 = vadd.f32 %v2982_v17, %v2981_v59  ;;  %v2984_v22 = vpop.f32.mrb[14].mxu1 }
 0x48a   : > { %v2985_v5 = vpop.f32.mrb[15].mxu1 }
 0x48b   : > { %v4637_v37 = vadd.f32 %v2985_v5, %v2984_v22 }
 0x48f   : > { %v2987_v14 = vpop.f32.mrb[16].mxu1 }
 0x490   : > { %v2988_v29 = vpop.f32.mrb[17].mxu1 }
 0x491   : > { %v4639_v52 = vadd.f32 %v2988_v29, %v2987_v14  ;;  %v2990_v56 = vpop.f32.mrb[18].mxu1  ;;  %v1976_v14 = vld [vmem:[#allocation2 + $0x30] sm:$0xff] }
 0x492   : > { %v2991_v1 = vpop.f32.mrb[19].mxu1 }
 0x493   : > { %v4641_v53 = vadd.f32 %v2991_v1, %v2990_v56 }
 0x497   : > { %v2993_v62 = vpop.f32.mrb[20].mxu1 }
 0x498   : > { %v2994_v16 = vpop.f32.mrb[21].mxu1 }
 0x499   : > { %v4643_v25 = vadd.f32 %v2994_v16, %v2993_v62  ;;  %v2996_v39 = vpop.f32.mrb[22].mxu1  ;;  %v1977_v62 = vld [vmem:[#allocation2 + $0x38] sm:$0xff] }
 0x49a   : > { %v2997_v61 = vpop.f32.mrb[23].mxu1 }
 0x49b   : > { %v4645_v11 = vadd.f32 %v2997_v61, %v2996_v39 }
 0x49f   : > { %v2999_v50 = vpop.f32.mrb[24].mxu1 }
 0x4a0   : > { %v3000_v8 = vpop.f32.mrb[25].mxu1 }
 0x4a1   : > { %v4647_v63 = vadd.f32 %v3000_v8, %v2999_v50  ;;  %v3002_v9 = vpop.f32.mrb[26].mxu1 }
 0x4a2   : > { %v3003_v18 = vpop.f32.mrb[27].mxu1 }
 0x4a3   : > { %v4649_v15 = vadd.f32 %v3003_v18, %v3002_v9  ;;  %v1978_v9 = vld [vmem:[#allocation2 + $0x40] sm:$0xff] }
 0x4af   : > { %v3021_v54 = vpop.f32.mrb[28].mxu1 }
 0x4b0   : > { %v3022_v10 = vpop.f32.mrb[29].mxu1 }
 0x4b1   : > { %v3023_v3 = vadd.f32 %v3022_v10, %v3021_v54  ;;  %v3024_v24 = vpop.f32.mrb[30].mxu1 }
 0x4b2   : > { %v3025_v48 = vpop.f32.mrb[31].mxu1 }
 0x4b3   : > { %v3026_v49 = vadd.f32 %v3025_v48, %v3024_v24  ;;  %v2118_v32 = vadd.f32 %v3023_v3, %v2959_v46  ;;  %v1979_v3 = vld [vmem:[#allocation2 + $0x48] sm:$0xff] }
 0x4b5   : > { %v2180_v43 = vadd.f32 %v2118_v32, %v1970_v35  ;;  %v2121_v6 = vadd.f32 %v3026_v49, %v2962_v47 }
 0x4b7   : > { %v3027_v57 = vpop.f32.mrb[32].mxu1  ;;  %2196 = vst [vmem:[#allocation2] sm:$0xff] %v2180_v43  ;;  %v2181_v55 = vadd.f32 %v2121_v6, %v1971_v40  ;;  %v1980_v40 = vld [vmem:[#allocation2 + $0x50] sm:$0xff] }
 0x4b8   : > { %v3028_v28 = vpop.f32.mrb[33].mxu1 }
 0x4b9   : > { %v3029_v2 = vadd.f32 %v3028_v28, %v3027_v57  ;;  %v3030_v4 = vpop.f32.mrb[34].mxu1  ;;  %2197 = vst [vmem:[#allocation2 + $0x8] sm:$0xff] %v2181_v55  ;;  %v1981_v55 = vld [vmem:[#allocation2 + $0x58] sm:$0xff] }
 0x4ba   : > { %v3031_v13 = vpop.f32.mrb[35].mxu1 }
 0x4bb   : > { %v2126_v33 = vadd.f32 %v3029_v2, %v4625_v19  ;;  %v3032_v12 = vadd.f32 %v3031_v13, %v3030_v4 }
 0x4bd   : > { %v2182_v36 = vadd.f32 %v2126_v33, %v1972_v7  ;;  %v2129_v23 = vadd.f32 %v3032_v12, %v2968_v0  ;;  %v1982_v33 = vld [vmem:[#allocation2 + $0x60] sm:$0xff] }
 0x4bf   : > { %2198 = vst [vmem:[#allocation2 + $0x10] sm:$0xff] %v2182_v36  ;;  %v2183_v46 = vadd.f32 %v2129_v23, %v1973_v21  ;;  %v3033_v31 = vpop.f32.mrb[36].mxu1  ;;  %v1983_v23 = vld [vmem:[#allocation2 + $0x68] sm:$0xff] }
 0x4c0   : > { %v3034_v51 = vpop.f32.mrb[37].mxu1 }
 0x4c1   : > { %2199 = vst [vmem:[#allocation2 + $0x18] sm:$0xff] %v2183_v46  ;;  %v3035_v47 = vadd.f32 %v3034_v51, %v3033_v31  ;;  %v3036_v38 = vpop.f32.mrb[38].mxu1 }
 0x4c2   : > { %v3037_v30 = vpop.f32.mrb[39].mxu1 }
 0x4c3   : > { %v2134_v34 = vadd.f32 %v3035_v47, %v4627_v20  ;;  %v3038_v42 = vadd.f32 %v3037_v30, %v3036_v38 }
 0x4c5   : > { %v2184_v60 = vadd.f32 %v2134_v34, %v1974_v45  ;;  %v2137_v19 = vadd.f32 %v3038_v42, %v4629_v41  ;;  %v1984_v45 = vld [vmem:[#allocation2 + $0x70] sm:$0xff] }
 0x4c7   : > { %2200 = vst [vmem:[#allocation2 + $0x20] sm:$0xff] %v2184_v60  ;;  %v2185_v59 = vadd.f32 %v2137_v19, %v1975_v58  ;;  %v3039_v17 = vpop.f32.mrb[40].mxu1  ;;  %v1985_v58 = vld [vmem:[#allocation2 + $0x78] sm:$0xff] }
 0x4c8   : > { %v3040_v0 = vpop.f32.mrb[41].mxu1 }
 0x4c9   : > { %2201 = vst [vmem:[#allocation2 + $0x28] sm:$0xff] %v2185_v59  ;;  %v3041_v22 = vadd.f32 %v3040_v0, %v3039_v17  ;;  %v3042_v5 = vpop.f32.mrb[42].mxu1 }
 0x4ca   : > { %v3043_v29 = vpop.f32.mrb[43].mxu1 }
 0x4cb   : > { %v2142_v56 = vadd.f32 %v3041_v22, %v4631_v27  ;;  %v3044_v1 = vadd.f32 %v3043_v29, %v3042_v5 }
 0x4cd   : > { %v2186_v16 = vadd.f32 %v2142_v56, %v1976_v14  ;;  %v2145_v20 = vadd.f32 %v3044_v1, %v4633_v26 }
 0x4cf   : > { %2202 = vst [vmem:[#allocation2 + $0x30] sm:$0xff] %v2186_v16  ;;  %v2187_v39 = vadd.f32 %v2145_v20, %v1977_v62  ;;  %v3045_v61 = vpop.f32.mrb[44].mxu1 }
 0x4d0   : > { %v3046_v41 = vpop.f32.mrb[45].mxu1 }
 0x4d1   : > { %2203 = vst [vmem:[#allocation2 + $0x38] sm:$0xff] %v2187_v39  ;;  %v3047_v50 = vadd.f32 %v3046_v41, %v3045_v61  ;;  %v3048_v8 = vpop.f32.mrb[46].mxu1 }
 0x4d2   : > { %v3049_v18 = vpop.f32.mrb[47].mxu1 }
 0x4d3   : > { %v2150_v54 = vadd.f32 %v3047_v50, %v4635_v44  ;;  %v3050_v10 = vadd.f32 %v3049_v18, %v3048_v8 }
 0x4d5   : > { %v2188_v24 = vadd.f32 %v2150_v54, %v1978_v9  ;;  %v2153_v27 = vadd.f32 %v3050_v10, %v4637_v37 }
 0x4d7   : > { %2204 = vst [vmem:[#allocation2 + $0x40] sm:$0xff] %v2188_v24  ;;  %v2189_v48 = vadd.f32 %v2153_v27, %v1979_v3  ;;  %v3051_v35 = vpop.f32.mrb[48].mxu1 }
 0x4d8   : > { %v3052_v26 = vpop.f32.mrb[49].mxu1 }
 0x4d9   : > { %2205 = vst [vmem:[#allocation2 + $0x48] sm:$0xff] %v2189_v48  ;;  %v3053_v49 = vadd.f32 %v3052_v26, %v3051_v35  ;;  %v3054_v32 = vpop.f32.mrb[50].mxu1 }
 0x4da   : > { %v3055_v43 = vpop.f32.mrb[51].mxu1 }
 0x4db   : > { %v2158_v6 = vadd.f32 %v3053_v49, %v4639_v52  ;;  %v3056_v57 = vadd.f32 %v3055_v43, %v3054_v32 }
 0x4dd   : > { %v2190_v28 = vadd.f32 %v2158_v6, %v1980_v40  ;;  %v2161_v44 = vadd.f32 %v3056_v57, %v4641_v53 }
 0x4df   : > { %2206 = vst [vmem:[#allocation2 + $0x50] sm:$0xff] %v2190_v28  ;;  %v2191_v2 = vadd.f32 %v2161_v44, %v1981_v55  ;;  %v3057_v4 = vpop.f32.mrb[52].mxu1 }
 0x4e0   : > { %v3058_v37 = vpop.f32.mrb[53].mxu1 }
 0x4e1   : > { %2207 = vst [vmem:[#allocation2 + $0x58] sm:$0xff] %v2191_v2  ;;  %v3059_v7 = vadd.f32 %v3058_v37, %v3057_v4  ;;  %v3060_v13 = vpop.f32.mrb[54].mxu1 }
 0x4e2   : > { %v3061_v12 = vpop.f32.mrb[55].mxu1 }
 0x4e3   : > { %v2166_v21 = vadd.f32 %v3059_v7, %v4643_v25  ;;  %v3062_v36 = vadd.f32 %v3061_v12, %v3060_v13 }
 0x4e5   : > { %v2192_v46 = vadd.f32 %v2166_v21, %v1982_v33  ;;  %v2169_v52 = vadd.f32 %v3062_v36, %v4645_v11 }
 0x4e7   : > { %2208 = vst [vmem:[#allocation2 + $0x60] sm:$0xff] %v2192_v46  ;;  %v2193_v31 = vadd.f32 %v2169_v52, %v1983_v23  ;;  %v3063_v51 = vpop.f32.mrb[56].mxu1 }
 0x4e8   : > { %v3064_v53 = vpop.f32.mrb[57].mxu1 }
 0x4e9   : > { %2209 = vst [vmem:[#allocation2 + $0x68] sm:$0xff] %v2193_v31  ;;  %v3065_v47 = vadd.f32 %v3064_v53, %v3063_v51  ;;  %v3066_v38 = vpop.f32.mrb[58].mxu1 }
 0x4ea   : > { %v3067_v30 = vpop.f32.mrb[59].mxu1 }
 0x4eb   : > { %v2174_v34 = vadd.f32 %v3065_v47, %v4647_v63  ;;  %v3068_v42 = vadd.f32 %v3067_v30, %v3066_v38 }
 0x4ed   : > { %v2194_v60 = vadd.f32 %v2174_v34, %v1984_v45  ;;  %v2177_v25 = vadd.f32 %v3068_v42, %v4649_v15 }
 0x4ef   : > { %2210 = vst [vmem:[#allocation2 + $0x70] sm:$0xff] %v2194_v60  ;;  %v2195_v19 = vadd.f32 %v2177_v25, %v1985_v58 }
 0x4f1   : > { %2211 = vst [vmem:[#allocation2 + $0x78] sm:$0xff] %v2195_v19 }
 0x4f2 PF: > { %p2706_p2 = scmp.ne.s32.totalorder %s3495_s28, 2 }
 0x4f3   : > { %v2216_v11 = vld [vmem:[#allocation2] sm:$0xff] (!%p2706_p2)  ;;  %v2217_v59 = vld [vmem:[#allocation2 + $0x8] sm:$0xff] (!%p2706_p2)  ;;  %v2218_v17 = vld [vmem:[#allocation2 + $0x10] sm:$0xff] (!%p2706_p2) }
 0x4f4   : > { %2215 = sbr.rel (%p2706_p2) target bundleno = 1276 (0x4fc), region = 64  ;;  %v2808_v0 = vpack.c.bf16 (!%p2706_p2), %v2217_v59, %v2216_v11  ;;  %v2219_v63 = vld [vmem:[#allocation2 + $0x18] sm:$0xff] (!%p2706_p2)  ;;  %v2220_v22 = vld [vmem:[#allocation2 + $0x20] sm:$0xff] (!%p2706_p2)  ;;  %v2221_v5 = vld [vmem:[#allocation2 + $0x28] sm:$0xff] (!%p2706_p2) }
 0x4f5   : > { %v2813_v14 = vpack.c.bf16 (!%p2706_p2), %v2219_v63, %v2218_v17  ;;  %v2818_v29 = vpack.c.bf16 (!%p2706_p2), %v2221_v5, %v2220_v22  ;;  %v2222_v15 = vld [vmem:[#allocation2 + $0x30] sm:$0xff] (!%p2706_p2)  ;;  %v2223_v56 = vld [vmem:[#allocation2 + $0x38] sm:$0xff] (!%p2706_p2)  ;;  %v2224_v1 = vld [vmem:[#allocation2 + $0x40] sm:$0xff] (!%p2706_p2) }
 0x4f6   : > { %2809 = vst [vmem:[%s3684_s15] sm:$0xff] (!%p2706_p2), %v2808_v0   ;;  %v2823_v62 = vpack.c.bf16 (!%p2706_p2), %v2223_v56, %v2222_v15  ;;  %v2225_v16 = vld [vmem:[#allocation2 + $0x48] sm:$0xff] (!%p2706_p2)  ;;  %v2226_v20 = vld [vmem:[#allocation2 + $0x50] sm:$0xff] (!%p2706_p2)  ;;  %v2227_v39 = vld [vmem:[#allocation2 + $0x58] sm:$0xff] (!%p2706_p2) }
 0x4f7   : > { %2852 = vst [vmem:[%s3684_s15 + $0x8] sm:$0xff] (!%p2706_p2), %v2813_v14   ;;  %2853 = vst [vmem:[%s3684_s15 + $0x10] sm:$0xff] (!%p2706_p2), %v2818_v29   ;;  %v2828_v61 = vpack.c.bf16 (!%p2706_p2), %v2225_v16, %v2224_v1  ;;  %v2833_v41 = vpack.c.bf16 (!%p2706_p2), %v2227_v39, %v2226_v20  ;;  %v2228_v50 = vld [vmem:[#allocation2 + $0x60] sm:$0xff] (!%p2706_p2)  ;;  %v2229_v8 = vld [vmem:[#allocation2 + $0x68] sm:$0xff] (!%p2706_p2) }
 0x4f8   : > { %v2230_v9 = vld [vmem:[#allocation2 + $0x70] sm:$0xff] (!%p2706_p2)  ;;  %2854 = vst [vmem:[%s3684_s15 + $0x18] sm:$0xff] (!%p2706_p2), %v2823_v62   ;;  %v2838_v18 = vpack.c.bf16 (!%p2706_p2), %v2229_v8, %v2228_v50  ;;  %v2231_v54 = vld [vmem:[#allocation2 + $0x78] sm:$0xff] (!%p2706_p2) }
 0x4f9   : > { %2855 = vst [vmem:[%s3684_s15 + $0x20] sm:$0xff] (!%p2706_p2), %v2828_v61   ;;  %2856 = vst [vmem:[%s3684_s15 + $0x28] sm:$0xff] (!%p2706_p2), %v2833_v41   ;;  %v2843_v10 = vpack.c.bf16 (!%p2706_p2), %v2231_v54, %v2230_v9 }
 0x4fa   : > { %2857 = vst [vmem:[%s3684_s15 + $0x30] sm:$0xff] (!%p2706_p2), %v2838_v18  }
 0x4fb   : > { %2858 = vst [vmem:[%s3684_s15 + $0x38] sm:$0xff] %v2843_v10  }
 0x4fc PF: > { %s2763_s28 = sshll.u32 %s3499_s29, 10  ;;  %s2331_s16 = sshll.u32 %s3682_s20, 4  ;;  %s4682_s16 = int_to_ptr.vmem [resolvable:$true] %s2331_s16 }
 0x4fd   : > { %s4679_s12 = scalar_lea.hbm %s4785_s10, %s2763_s28  ;;  %s2313_s17 = scalar_lea.sflag [#allocation7], %s3657_s23 }
 0x4fe   : > { %s3383_s25 = scalar_lea.vmem %s4682_s16, 1024  ;;  %s3517_s14 = smov [#allocation6]  }
 0x4ff   : > { %p3384_p3 = scmp.ne.s32.totalorder %s4682_s16, %s3383_s25  ;;  %s3387_s21 = sshll.u32 %s3517_s14, 4  ;;  %s3388_s21 = int_to_ptr.vmem [resolvable:$false] %s3387_s21 }
 0x500   : > { %s3389_s24 = scalar_lea.vmem %s3388_s21, 2048  ;;  %p3390_p7 = scmp.lt.s32.totalorder %s4682_s16, %s3388_s21 }
 0x501   : > { %p3385_p4 = pnand %p3384_p3, %p3636_p13  ;;  %p3391_p8 = scmp.lt.s32.totalorder %s3389_s24, %s3383_s25 }
 0x503   : > { %p3386_p6 = pneg %p3385_p4  ;;  %p3392_p9 = por %p3391_p8, %p3390_p7 }
 0x505   : > { %p3393_p10 = pnand %p3392_p9, %p3386_p6 }
 0x507   : > { %3396 = shalt.err (!%p3393_p10)
}
 0x508   : > { %s3397_s20 = scalar_lea.hbm %s4679_s12, 1024  ;;  %s3401_s30 = scalar_lea.hbm %s4785_s10, 3072 }
 0x509   : > { %p3398_p11 = scmp.ne.s32.totalorder %s4679_s12, %s3397_s20  ;;  %p3402_p1 = scmp.lt.u32.totalorder %s4679_s12, %s4785_s10 }
 0x50a   : > { %p3403_p2 = scmp.lt.u32.totalorder %s3401_s30, %s3397_s20  ;;  %p3405_p4 = scmp.lt.u32.totalorder %s3397_s20, %s4679_s12 }
 0x50b   : > { %p3399_p12 = pnand %p3398_p11, %p3636_p13 }
 0x50c   : > { %p3404_p3 = por %p3403_p2, %p3402_p1 }
 0x50d   : > { %p3400_p0 = pneg %p3399_p12 }
 0x50e   : > { %p3406_p6 = por %p3405_p4, %p3404_p3 }
 0x510   : > { %p3407_p7 = pnand %p3406_p6, %p3400_p0 }
 0x512   : > { %3410 = shalt.err (!%p3407_p7)
}
 0x513   : > { %s3518_s0 = smov 64   ;;  %s3519_s25 = smov 4  }
 0x514   : > { %3237 = dma.vmem_to_hbm [thread:$0]  (%p3636_p13), %s4682_s16, 1024, %s4679_s12, %s2313_s17, %s3518_s0, %s3518_s0, %s3519_s25  }
 0x515   : > { %s4716_s24 = scalar_lea.hbm %s4786_s11, %s2763_s28  ;;  %s2347_s20 = sshll.u32 %s3684_s15, 4  ;;  %s4719_s20 = int_to_ptr.vmem [resolvable:$true] %s2347_s20 }
 0x516   : > { %s2318_s26 = scalar_lea.sflag [#allocation9], %s3657_s23  ;;  %s3411_s27 = scalar_lea.vmem %s4719_s20, 1024 }
 0x517   : > { %p3412_p8 = scmp.ne.s32.totalorder %s4719_s20, %s3411_s27  ;;  %s3520_s30 = smov [#allocation8]  }
 0x518   : > { %s3415_s12 = sshll.u32 %s3520_s30, 4  ;;  %s3416_s12 = int_to_ptr.vmem [resolvable:$false] %s3415_s12 }
 0x519   : > { %p3413_p9 = pnand %p3412_p8, %p3636_p13  ;;  %s3417_s29 = scalar_lea.vmem %s3416_s12, 2048 }
 0x51a   : > { %p3418_p11 = scmp.lt.s32.totalorder %s4719_s20, %s3416_s12  ;;  %p3419_p12 = scmp.lt.s32.totalorder %s3417_s29, %s3411_s27 }
 0x51b   : > { %p3414_p10 = pneg %p3413_p9 }
 0x51c   : > { %p3420_p0 = por %p3419_p12, %p3418_p11 }
 0x51e   : > { %p3421_p1 = pnand %p3420_p0, %p3414_p10 }
 0x520   : > { %3424 = shalt.err (!%p3421_p1)
}
 0x521   : > { %s3425_s15 = scalar_lea.hbm %s4716_s24, 1024  ;;  %s3429_s17 = scalar_lea.hbm %s4786_s11, 3072 }
 0x522   : > { %p3426_p2 = scmp.ne.s32.totalorder %s4716_s24, %s3425_s15  ;;  %p3430_p6 = scmp.lt.u32.totalorder %s4716_s24, %s4786_s11 }
 0x523   : > { %p3431_p7 = scmp.lt.u32.totalorder %s3429_s17, %s3425_s15  ;;  %p3433_p9 = scmp.lt.u32.totalorder %s3425_s15, %s4716_s24 }
 0x524   : > { %p3427_p3 = pnand %p3426_p2, %p3636_p13 }
 0x525   : > { %p3432_p8 = por %p3431_p7, %p3430_p6 }
 0x526   : > { %p3428_p4 = pneg %p3427_p3 }
 0x527   : > { %p3434_p10 = por %p3433_p9, %p3432_p8 }
 0x529   : > { %p3435_p11 = pnand %p3434_p10, %p3428_p4 }
 0x52b   : > { %3438 = shalt.err (!%p3435_p11)
}
 0x52c   : > { %3238 = dma.vmem_to_hbm [thread:$0]  (%p3636_p13), %s4719_s20, 1024, %s4716_s24, %s2318_s26, %s3518_s0, %s3518_s0, %s3519_s25  }
 0x52d PF: > { %p3248_p12 = scmp.ge.s32.totalorder %s3511_s13, 2  ;;  %s2362_s21 = sand.u32 1, %s3483_s1  }
 0x52e   : > { %s2363_s27 = scalar_lea.sflag [#allocation7], %s2362_s21 }
 0x52f   : > { %p3242_p0 = pnand %p3248_p12, %p3646_p5 }
 0x531   : > { %3474 = dma.done.wait (!%p3242_p0), %s2363_s27, 1024  }
 0x532   : > { %3476 = vsyncadd (!%p3242_p0), %s2363_s27, 4294966272  ;;  %s2372_s18 = scalar_lea.sflag [#allocation9], %s2362_s21 }
 0x533   : > { %3478 = dma.done.wait (!%p3242_p0), %s2372_s18, 1024  }
 0x534   : > { %3480 = vsyncadd (!%p3242_p0), %s2372_s18, 4294966272  ;;  %s38_s13 = sadd.s32 1, %s3511_s13   ;;  %s4886_s1 = sld [smem:[#allocation13_spill]] }
 0x535   : > { %p35_p1 = scmp.ge.s32.totalorder %s38_s13, 11   ;;  %s4887_s26 = sld [smem:[#allocation14_spill]] }
 0x536   : > { %s4888_s27 = sld [smem:[#allocation20_spill]]  ;;  %s4889_s28 = sld [smem:[#allocation15_spill]] }
 0x537   : > { %s4890_s29 = sld [smem:[#allocation16_spill]]  ;;  %s4891_s30 = sld [smem:[#allocation17_spill]] }
 0x538   : > { %s4892_s12 = sld [smem:[#allocation18_spill]]  ;;  %37 = sbr.rel (!%p35_p1) target bundleno = 32 (0x20), region = 122 }
 0x53f   :  { %2377 = vsyncpa [#allocation7], 1 }
 0x540   :  { %2379 = vsyncpa [#allocation7 + $0x1], 1 }
 0x541   :  { %2380 = vsyncpa [#allocation9], 1 }
 0x542   :  { %2382 = vsyncpa [#allocation9 + $0x1], 1 }

</bundles_post_ra>
